<compile_context>
chip_gen: v7x
topology: tpu7x:2x2x1
jax: 0.10.0
libtpu: 0.0.40
codegen_flags: <defaults>
</compile_context>

<pallas_src>
import jax
import jax.numpy as jnp
from jax.experimental import pallas as pl
from jax.experimental.pallas import tpu as pltpu

LRELU_SLOPE = 0.02      # nn.LeakyReLU(0.02) in the original module
LN_EPS = 1e-5           # nn.LayerNorm default eps
_LANES = 128            # vreg lane width


def _round_up(n, m):
    return ((n + m - 1) // m) * m


def _leaky(h):
    # For 0 <= slope <= 1, leaky_relu(h) == max(h, slope*h): mul+max, no select.
    return jnp.maximum(h, LRELU_SLOPE * h)


def _detect_num_tensorcores():
    """Best effort: v7x has 2 TensorCores per chip; v5e/v6e have 1."""
    try:
        kind = str(jax.devices()[0].device_kind).lower()
    except Exception:
        return 1
    return 2 if "v7" in kind else 1


def _disc_kernel(x_ref, w1_ref, b1_ref, w2_ref, b2_ref, w3_ref, b3_ref,
                 gw4_ref, s1_ref, s0_ref, out_ref):
    """Fused MLP forward for one lane-dense batch tile x_ref: [1, TB]."""
    x = x_ref[...]                                           # [1, TB] f32 (batch on lanes)

    # Linear(1, 40) + LeakyReLU -- K=1: pure VPU outer product, no MXU round trip.
    h = _leaky(w1_ref[...] * x + b1_ref[...])                # [40,1]*[1,TB] -> [40,TB]

    # Linear(40, 400) + LeakyReLU -- MXU, bf16 inputs / f32 accumulation.
    h = _leaky(jnp.dot(w2_ref[...], h.astype(w2_ref.dtype),
                       preferred_element_type=jnp.float32) + b2_ref[...])   # [400, TB]

    # Linear(400, 400) + LeakyReLU.
    h = _leaky(jnp.dot(w3_ref[...], h.astype(w3_ref.dtype),
                       preferred_element_type=jnp.float32) + b3_ref[...])   # [400, TB]

    # Fused LayerNorm(400) + Linear(400, 1); feature axis is the sublane axis.
    #   z = inv_std * (sum(h*g*w4) - mean*sum(g*w4)) + (sum(beta*w4) + b4)
    # Only three XLU reductions + two elementwise multiplies; the normalized
    # activation is never materialized. All accumulation stays f32.
    inv_f = 1.0 / h.shape[0]
    s_h = jnp.sum(h, axis=0, keepdims=True)                  # [1, TB]
    s_hh = jnp.sum(h * h, axis=0, keepdims=True)             # [1, TB]
    s_hg = jnp.sum(h * gw4_ref[...], axis=0, keepdims=True)  # [1, TB]
    mean = s_h * inv_f
    var = s_hh * inv_f - mean * mean                         # E[x^2] - mean^2 (f32)
    inv_std = jax.lax.rsqrt(var + LN_EPS)
    z = inv_std * (s_hg - mean * s1_ref[...]) + s0_ref[...]  # [1, TB]

    # Sigmoid via EUP exp + approximate reciprocal; lane-dense store.
    out_ref[...] = pl.reciprocal(1.0 + jnp.exp(-z), approx=True)


def discriminator2_forward(x, params, *, tb=2048, matmul_dtype=jnp.bfloat16):
    """x: [B, F] float32 (only column 0 is used, like input_tensor[:, :1]).

    Returns [B, 1] float32, same as the PyTorch module's forward.
    """
    w1, b1, w2, b2, w3, b3, g, beta, w4, b4 = params
    # Only the 400-wide matmul operands go to bf16; all elementwise math and
    # accumulation stay f32 (v5e has no bf16 VPU/EUP anyway).
    w2 = w2.astype(matmul_dtype)
    w3 = w3.astype(matmul_dtype)

    # Constants for the fused LayerNorm + Linear(400,1) epilogue (f32, tiny).
    gw4 = (g * w4).astype(jnp.float32)                       # [400, 1]
    s1 = jnp.sum(gw4).reshape(1, 1)                          # sum(g*w4)
    s0 = jnp.sum(beta * w4).reshape(1, 1) + b4               # sum(beta*w4) + b4

    B = x.shape[0]
    nc = _detect_num_tensorcores()

    Bp = _round_up(max(B, 1), _LANES)
    # Batch tile: lane-aligned, as big as tb allows (per-tile compute is ~1 us
    # while per-grid-step overhead is ~0.35 us, so bigger tiles amortize it).
    tb_eff = max(_LANES, (min(tb, Bp) // _LANES) * _LANES)
    # Only on multi-TensorCore chips (v7x) force enough grid steps to shard
    # the batch axis across cores; on v5e/v6e the grid is a serial loop.
    if nc > 1 and Bp >= nc * _LANES and Bp // tb_eff < nc:
        tb_eff = max(_LANES, (Bp // (nc * _LANES)) * _LANES)
    n_steps = pl.cdiv(Bp, tb_eff)
    if nc > 1:
        n_steps = _round_up(n_steps, nc)                     # balanced core split
    Bp = n_steps * tb_eff

    # Lane-dense input: batch on the lane axis -> [1, Bp].
    x1 = x[:, 0].astype(jnp.float32)
    x1 = jnp.pad(x1, (0, Bp - B)).reshape(1, Bp)

    args = (x1, w1, b1, w2, b2, w3, b3, gw4, s1, s0)

    def run(dim_sem):
        def rep(a):
            # full-array block, replicated (constant index) across the batch grid
            return pl.BlockSpec(a.shape, lambda i: (0,) * a.ndim)

        return pl.pallas_call(
            _disc_kernel,
            out_shape=jax.ShapeDtypeStruct((1, Bp), jnp.float32),
            grid_spec=pltpu.PrefetchScalarGridSpec(
                num_scalar_prefetch=0,
                grid=(n_steps,),
                in_specs=[
                    pl.BlockSpec((1, tb_eff), lambda i: (0, i)),   # x tile (lane-dense)
                    rep(w1), rep(b1),
                    rep(w2), rep(b2),
                    rep(w3), rep(b3),
                    rep(gw4), rep(s1), rep(s0),
                ],
                out_specs=pl.BlockSpec((1, tb_eff), lambda i: (0, i)),  # lane-dense out
            ),
            compiler_params=pltpu.CompilerParams(
                dimension_semantics=(dim_sem,)),
        )(*args)

    if nc > 1:
        # v7x: request a genuine cross-TensorCore split of the batch axis;
        # fall back to the previously-validated "parallel" lowering if the
        # installed jax rejects CORE_PARALLEL for this grid.
        try:
            out = run(pltpu.CORE_PARALLEL)
        except Exception:
            out = run("parallel")
    else:
        out = run("parallel")

    return out[0, :B].reshape(B, 1)


def init_params(key):
    """Deterministic init matching nn.Linear / nn.LayerNorm shapes (kernel layout)."""
    ks = jax.random.split(key, 4)

    def linear_t(k, fan_in, fan_out):
        # weight stored as [fan_out, fan_in] (PyTorch nn.Linear.weight layout)
        kw, kb = jax.random.split(k)
        bound = 1.0 / (fan_in ** 0.5)
        w = jax.random.uniform(kw, (fan_out, fan_in), jnp.float32, -bound, bound)
        b = jax.random.uniform(kb, (fan_out, 1), jnp.float32, -bound, bound)
        return w, b

    w1, b1 = linear_t(ks[0], 1, 40)        # [40,1], [40,1]
    w2, b2 = linear_t(ks[1], 40, 400)      # [400,40], [400,1]
    w3, b3 = linear_t(ks[2], 400, 400)     # [400,400], [400,1]
    g = jnp.ones((400, 1), jnp.float32)    # LayerNorm weight
    beta = jnp.zeros((400, 1), jnp.float32)
    w4t, b4 = linear_t(ks[3], 400, 1)      # [1,400], [1,1]
    w4 = w4t.T                             # [400,1]
    return (w1, b1, w2, b2, w3, b3, g, beta, w4, b4)


def reference_forward(x, params, matmul_dtype=jnp.float32):
    """Pure-JAX reference (batch-on-rows layout, explicit LayerNorm + final Linear),
    optionally with the same bf16 matmul-input casts as the kernel."""
    w1, b1, w2, b2, w3, b3, g, beta, w4, b4 = params
    slope = LRELU_SLOPE

    def leaky(h):
        return jnp.where(h > 0, h, slope * h)

    h = x[:, :1].astype(jnp.float32)                        # [B, 1]
    h = leaky(h @ w1.T + b1.T)                              # [B, 40]
    h = leaky(jnp.dot(h.astype(matmul_dtype), w2.T.astype(matmul_dtype),
                      preferred_element_type=jnp.float32) + b2.T)  # [B, 400]
    h = leaky(jnp.dot(h.astype(matmul_dtype), w3.T.astype(matmul_dtype),
                      preferred_element_type=jnp.float32) + b3.T)  # [B, 400]
    mean = jnp.mean(h, axis=-1, keepdims=True)
    var = jnp.mean((h - mean) ** 2, axis=-1, keepdims=True)
    h = (h - mean) * jax.lax.rsqrt(var + LN_EPS) * g.T + beta.T
    z = h @ w4 + b4                                         # [B, 1]
    return jax.nn.sigmoid(z)


if __name__ == "__main__":
    key = jax.random.PRNGKey(0)
    kp, kx = jax.random.split(key)
    params = init_params(kp)

    # Input mimics the stacked (input, label) columns used in training: [B, 2].
    x = jax.random.normal(kx, (8, 2), jnp.float32)

    out = discriminator2_forward(x, params)
    out = jax.block_until_ready(out)
    assert out.shape == (8, 1)
    assert bool(jnp.all(jnp.isfinite(out)))

    # Matched-precision reference (same bf16 MXU inputs, f32 accumulation):
    ref_bf16 = reference_forward(x, params, matmul_dtype=jnp.bfloat16)
    # Full-f32 reference (the original module's math, explicit LayerNorm):
    ref_f32 = reference_forward(x, params, matmul_dtype=jnp.float32)

    # Tolerances account for bf16 MXU inputs, the fused single-pass LN variance
    # and the approximate reciprocal in the sigmoid; accumulation is f32.
    assert jnp.allclose(out, ref_bf16, atol=1e-2, rtol=1e-2), (out, ref_bf16)
    assert jnp.allclose(out, ref_f32, atol=5e-2, rtol=5e-2), (out, ref_f32)

    # Non-multiple-of-128 batch exercises the lane padding + slice-off path.
    x2 = jax.random.normal(jax.random.PRNGKey(1), (200, 2), jnp.float32)
    out2 = jax.block_until_ready(discriminator2_forward(x2, params))
    ref2 = reference_forward(x2, params, matmul_dtype=jnp.float32)
    assert out2.shape == (200, 1)
    assert jnp.allclose(out2, ref2, atol=5e-2, rtol=5e-2)

    print("KERNEL_OK")
</pallas_src>

<mosaic_0001>
module attributes {stable_mosaic.version = 11 : i64} {
  func.func @_disc_kernel(%arg0: i32, %arg1: memref<1x128xf32, #tpu.memory_space<vmem>>, %arg2: memref<40x1xf32, #tpu.memory_space<vmem>>, %arg3: memref<40x1xf32, #tpu.memory_space<vmem>>, %arg4: memref<400x40xbf16, #tpu.memory_space<vmem>>, %arg5: memref<400x1xf32, #tpu.memory_space<vmem>>, %arg6: memref<400x400xbf16, #tpu.memory_space<vmem>>, %arg7: memref<400x1xf32, #tpu.memory_space<vmem>>, %arg8: memref<400x1xf32, #tpu.memory_space<vmem>>, %arg9: memref<1x1xf32, #tpu.memory_space<vmem>>, %arg10: memref<1x1xf32, #tpu.memory_space<vmem>>, %arg11: memref<1x128xf32, #tpu.memory_space<vmem>>) attributes {dimension_semantics = [#tpu.dimension_semantics<parallel>], iteration_bounds = array<i64: 1>, scalar_prefetch = 0 : i64, scratch_operands = 0 : i64, tpu.core_type = #tpu.core_type<tc>, window_params = [{transform_indices = @transform_0, window_bounds = array<i64: 1, 128>}, {pipeline_mode = #tpu.pipeline_mode<synchronous>, transform_indices = @transform_1, window_bounds = array<i64: 40, 1>}, {pipeline_mode = #tpu.pipeline_mode<synchronous>, transform_indices = @transform_2, window_bounds = array<i64: 40, 1>}, {pipeline_mode = #tpu.pipeline_mode<synchronous>, transform_indices = @transform_3, window_bounds = array<i64: 400, 40>}, {pipeline_mode = #tpu.pipeline_mode<synchronous>, transform_indices = @transform_4, window_bounds = array<i64: 400, 1>}, {pipeline_mode = #tpu.pipeline_mode<synchronous>, transform_indices = @transform_5, window_bounds = array<i64: 400, 400>}, {pipeline_mode = #tpu.pipeline_mode<synchronous>, transform_indices = @transform_6, window_bounds = array<i64: 400, 1>}, {pipeline_mode = #tpu.pipeline_mode<synchronous>, transform_indices = @transform_7, window_bounds = array<i64: 400, 1>}, {pipeline_mode = #tpu.pipeline_mode<synchronous>, transform_indices = @transform_8, window_bounds = array<i64: 1, 1>}, {pipeline_mode = #tpu.pipeline_mode<synchronous>, transform_indices = @transform_9, window_bounds = array<i64: 1, 1>}, {transform_indices = @transform_10, window_bounds = array<i64: 1, 128>}]} {
    %c0 = arith.constant 0 : index
    %c0_0 = arith.constant 0 : index
    %0 = vector.load %arg1[%c0, %c0_0] : memref<1x128xf32, #tpu.memory_space<vmem>>, vector<1x128xf32>
    %c0_1 = arith.constant 0 : index
    %c0_2 = arith.constant 0 : index
    %1 = vector.load %arg2[%c0_1, %c0_2] : memref<40x1xf32, #tpu.memory_space<vmem>>, vector<40x1xf32>
    %2 = vector.broadcast %1 : vector<40x1xf32> to vector<40x128xf32>
    %3 = vector.broadcast %0 : vector<1x128xf32> to vector<40x128xf32>
    %4 = arith.mulf %2, %3 : vector<40x128xf32>
    %c0_3 = arith.constant 0 : index
    %c0_4 = arith.constant 0 : index
    %5 = vector.load %arg3[%c0_3, %c0_4] : memref<40x1xf32, #tpu.memory_space<vmem>>, vector<40x1xf32>
    %6 = vector.broadcast %5 : vector<40x1xf32> to vector<40x128xf32>
    %7 = arith.addf %4, %6 : vector<40x128xf32>
    %cst = arith.constant 2.000000e-02 : f32
    %8 = vector.broadcast %cst : f32 to vector<40x128xf32>
    %9 = arith.mulf %8, %7 : vector<40x128xf32>
    %10 = arith.maximumf %7, %9 : vector<40x128xf32>
    %c0_5 = arith.constant 0 : index
    %c0_6 = arith.constant 0 : index
    %11 = vector.load %arg4[%c0_5, %c0_6] : memref<400x40xbf16, #tpu.memory_space<vmem>>, vector<400x40xbf16>
    %12 = arith.truncf %10 : vector<40x128xf32> to vector<40x128xbf16>
    %cst_7 = arith.constant dense<0.000000e+00> : vector<400x128xf32>
    %13 = tpu.matmul %11, %12, %cst_7 {dimension_numbers = #tpu.dot_dimension_numbers<[1], [0], [0], [1], [0, 0, 1, 1], [], []>} : vector<400x40xbf16>, vector<40x128xbf16>, vector<400x128xf32> -> vector<400x128xf32>
    %c0_8 = arith.constant 0 : index
    %c0_9 = arith.constant 0 : index
    %14 = vector.load %arg5[%c0_8, %c0_9] : memref<400x1xf32, #tpu.memory_space<vmem>>, vector<400x1xf32>
    %15 = vector.broadcast %14 : vector<400x1xf32> to vector<400x128xf32>
    %16 = arith.addf %13, %15 : vector<400x128xf32>
    %cst_10 = arith.constant 2.000000e-02 : f32
    %17 = vector.broadcast %cst_10 : f32 to vector<400x128xf32>
    %18 = arith.mulf %17, %16 : vector<400x128xf32>
    %19 = arith.maximumf %16, %18 : vector<400x128xf32>
    %c0_11 = arith.constant 0 : index
    %c0_12 = arith.constant 0 : index
    %20 = vector.load %arg6[%c0_11, %c0_12] : memref<400x400xbf16, #tpu.memory_space<vmem>>, vector<400x400xbf16>
    %21 = arith.truncf %19 : vector<400x128xf32> to vector<400x128xbf16>
    %cst_13 = arith.constant dense<0.000000e+00> : vector<400x128xf32>
    %22 = tpu.matmul %20, %21, %cst_13 {dimension_numbers = #tpu.dot_dimension_numbers<[1], [0], [0], [1], [0, 0, 1, 1], [], []>} : vector<400x400xbf16>, vector<400x128xbf16>, vector<400x128xf32> -> vector<400x128xf32>
    %c0_14 = arith.constant 0 : index
    %c0_15 = arith.constant 0 : index
    %23 = vector.load %arg7[%c0_14, %c0_15] : memref<400x1xf32, #tpu.memory_space<vmem>>, vector<400x1xf32>
    %24 = vector.broadcast %23 : vector<400x1xf32> to vector<400x128xf32>
    %25 = arith.addf %22, %24 : vector<400x128xf32>
    %cst_16 = arith.constant 2.000000e-02 : f32
    %26 = vector.broadcast %cst_16 : f32 to vector<400x128xf32>
    %27 = arith.mulf %26, %25 : vector<400x128xf32>
    %28 = arith.maximumf %25, %27 : vector<400x128xf32>
    %cst_17 = arith.constant dense<0.000000e+00> : vector<128xf32>
    %29 = vector.multi_reduction <add>, %28, %cst_17 [0] : vector<400x128xf32> to vector<128xf32>
    %30 = vector.shape_cast %29 : vector<128xf32> to vector<1x128xf32>
    %31 = arith.mulf %28, %28 : vector<400x128xf32>
    %cst_18 = arith.constant dense<0.000000e+00> : vector<128xf32>
    %32 = vector.multi_reduction <add>, %31, %cst_18 [0] : vector<400x128xf32> to vector<128xf32>
    %33 = vector.shape_cast %32 : vector<128xf32> to vector<1x128xf32>
    %c0_19 = arith.constant 0 : index
    %c0_20 = arith.constant 0 : index
    %34 = vector.load %arg8[%c0_19, %c0_20] : memref<400x1xf32, #tpu.memory_space<vmem>>, vector<400x1xf32>
    %35 = vector.broadcast %34 : vector<400x1xf32> to vector<400x128xf32>
    %36 = arith.mulf %28, %35 : vector<400x128xf32>
    %cst_21 = arith.constant dense<0.000000e+00> : vector<128xf32>
    %37 = vector.multi_reduction <add>, %36, %cst_21 [0] : vector<400x128xf32> to vector<128xf32>
    %38 = vector.shape_cast %37 : vector<128xf32> to vector<1x128xf32>
    %cst_22 = arith.constant 2.500000e-03 : f32
    %39 = vector.broadcast %cst_22 : f32 to vector<1x128xf32>
    %40 = arith.mulf %30, %39 : vector<1x128xf32>
    %cst_23 = arith.constant 2.500000e-03 : f32
    %41 = vector.broadcast %cst_23 : f32 to vector<1x128xf32>
    %42 = arith.mulf %33, %41 : vector<1x128xf32>
    %43 = arith.mulf %40, %40 : vector<1x128xf32>
    %44 = arith.subf %42, %43 : vector<1x128xf32>
    %cst_24 = arith.constant 9.99999974E-6 : f32
    %45 = vector.broadcast %cst_24 : f32 to vector<1x128xf32>
    %46 = arith.addf %44, %45 : vector<1x128xf32>
    %47 = math.rsqrt %46 : vector<1x128xf32>
    %c0_25 = arith.constant 0 : index
    %c0_26 = arith.constant 0 : index
    %48 = vector.load %arg9[%c0_25, %c0_26] : memref<1x1xf32, #tpu.memory_space<vmem>>, vector<1x1xf32>
    %49 = vector.broadcast %48 : vector<1x1xf32> to vector<1x128xf32>
    %50 = arith.mulf %40, %49 : vector<1x128xf32>
    %51 = arith.subf %38, %50 : vector<1x128xf32>
    %52 = arith.mulf %47, %51 : vector<1x128xf32>
    %c0_27 = arith.constant 0 : index
    %c0_28 = arith.constant 0 : index
    %53 = vector.load %arg10[%c0_27, %c0_28] : memref<1x1xf32, #tpu.memory_space<vmem>>, vector<1x1xf32>
    %54 = vector.broadcast %53 : vector<1x1xf32> to vector<1x128xf32>
    %55 = arith.addf %52, %54 : vector<1x128xf32>
    %cst_29 = arith.constant 0.000000e+00 : f32
    %56 = vector.broadcast %cst_29 : f32 to vector<1x128xf32>
    %57 = arith.subf %56, %55 : vector<1x128xf32>
    %58 = math.exp %57 : vector<1x128xf32>
    %cst_30 = arith.constant 1.000000e+00 : f32
    %59 = vector.broadcast %cst_30 : f32 to vector<1x128xf32>
    %60 = arith.addf %59, %58 : vector<1x128xf32>
    %61 = tpu.reciprocal %60 {approx = true} : vector<1x128xf32> -> vector<1x128xf32>
    %c0_31 = arith.constant 0 : index
    %c0_32 = arith.constant 0 : index
    %62 = vector.load %arg11[%c0_31, %c0_32] : memref<1x128xf32, #tpu.memory_space<vmem>>, vector<1x128xf32>
    tpu.vector_store %arg11[%c0_31, %c0_32], %61 {strides = array<i32>} : memref<1x128xf32, #tpu.memory_space<vmem>>, vector<1x128xf32>,
    return
  }
  func.func @transform_0(%arg0: i32) -> (i32, i32) {
    %c0_i32 = arith.constant 0 : i32
    %c0_i32_0 = arith.constant 0 : i32
    return %c0_i32, %arg0 : i32, i32
  }
  func.func @transform_1(%arg0: i32) -> (i32, i32) {
    %c0_i32 = arith.constant 0 : i32
    %c0_i32_0 = arith.constant 0 : i32
    %c0_i32_1 = arith.constant 0 : i32
    return %c0_i32, %c0_i32_0 : i32, i32
  }
  func.func @transform_2(%arg0: i32) -> (i32, i32) {
    %c0_i32 = arith.constant 0 : i32
    %c0_i32_0 = arith.constant 0 : i32
    %c0_i32_1 = arith.constant 0 : i32
    return %c0_i32, %c0_i32_0 : i32, i32
  }
  func.func @transform_3(%arg0: i32) -> (i32, i32) {
    %c0_i32 = arith.constant 0 : i32
    %c0_i32_0 = arith.constant 0 : i32
    %c0_i32_1 = arith.constant 0 : i32
    return %c0_i32, %c0_i32_0 : i32, i32
  }
  func.func @transform_4(%arg0: i32) -> (i32, i32) {
    %c0_i32 = arith.constant 0 : i32
    %c0_i32_0 = arith.constant 0 : i32
    %c0_i32_1 = arith.constant 0 : i32
    return %c0_i32, %c0_i32_0 : i32, i32
  }
  func.func @transform_5(%arg0: i32) -> (i32, i32) {
    %c0_i32 = arith.constant 0 : i32
    %c0_i32_0 = arith.constant 0 : i32
    %c0_i32_1 = arith.constant 0 : i32
    return %c0_i32, %c0_i32_0 : i32, i32
  }
  func.func @transform_6(%arg0: i32) -> (i32, i32) {
    %c0_i32 = arith.constant 0 : i32
    %c0_i32_0 = arith.constant 0 : i32
    %c0_i32_1 = arith.constant 0 : i32
    return %c0_i32, %c0_i32_0 : i32, i32
  }
  func.func @transform_7(%arg0: i32) -> (i32, i32) {
    %c0_i32 = arith.constant 0 : i32
    %c0_i32_0 = arith.constant 0 : i32
    %c0_i32_1 = arith.constant 0 : i32
    return %c0_i32, %c0_i32_0 : i32, i32
  }
  func.func @transform_8(%arg0: i32) -> (i32, i32) {
    %c0_i32 = arith.constant 0 : i32
    %c0_i32_0 = arith.constant 0 : i32
    %c0_i32_1 = arith.constant 0 : i32
    return %c0_i32, %c0_i32_0 : i32, i32
  }
  func.func @transform_9(%arg0: i32) -> (i32, i32) {
    %c0_i32 = arith.constant 0 : i32
    %c0_i32_0 = arith.constant 0 : i32
    %c0_i32_1 = arith.constant 0 : i32
    return %c0_i32, %c0_i32_0 : i32, i32
  }
  func.func @transform_10(%arg0: i32) -> (i32, i32) {
    %c0_i32 = arith.constant 0 : i32
    %c0_i32_0 = arith.constant 0 : i32
    return %c0_i32, %arg0 : i32, i32
  }
}

</mosaic_0001>

<bundles_post_ra>
// kernel: tpu_custom_call.1
= control target key start
LH: loop header
LB: loop body
LE: loop exit
PB: predicated region body
PF: predicated region fallthrough
CT: control target
= control target key end

     0   :  { %s5320_s0 = inlined_call_operand.vmem [shape: f32[1,128], index: 0, kind: input, shape index: {}]   ;;  %s5321_s1 = inlined_call_operand.vmem [shape: f32[40,1], index: 1, kind: input, shape index: {}]   ;;  %s5322_s2 = inlined_call_operand.vmem [shape: f32[40,1], index: 2, kind: input, shape index: {}]   ;;  %s5323_s3 = inlined_call_operand.vmem [shape: bf16[400,40], index: 3, kind: input, shape index: {}]   ;;  %s5324_s4 = inlined_call_operand.vmem [shape: f32[400,1], index: 4, kind: input, shape index: {}]   ;;  %s5325_s5 = inlined_call_operand.vmem [shape: bf16[400,400], index: 5, kind: input, shape index: {}]   ;;  %s5326_s6 = inlined_call_operand.vmem [shape: f32[400,1], index: 6, kind: input, shape index: {}]   ;;  %s5327_s7 = inlined_call_operand.vmem [shape: f32[400,1], index: 7, kind: input, shape index: {}]   ;;  %s5328_s8 = inlined_call_operand.<no memory space> [shape: f32[1,1], index: 8, kind: input, shape index: {}]   ;;  %s5329_s10 = inlined_call_operand.hbm [shape: f32[1,128], index: 10, kind: output, shape index: {}]   ;;  %s5330_s9 = inlined_call_operand.<no memory space> [shape: f32[1,1], index: 9, kind: input, shape index: {}]  }
   0x1   :  { %v15_v0 = vstv %s5328_s8  ;;  %v17_v1 = vstv %s5330_s9 }
   0x2   :  { %16 = vst [vmem:[#allocation2] sm:$0x1] %v15_v0  ;;  %18 = vst [vmem:[#allocation3] sm:$0x1] %v17_v1 }
   0x3   :  { %v83_v2 = vld [vmem:[%s5322_s2] sm:$0xff]  ;;  %v5331_v4 = vmov 0   ;;  %v84_v5 = vld [vmem:[%s5322_s2 + $0x8] sm:$0xff]  ;;  %v45_v7 = vld [vmem:[%s5321_s1 + $0x18] sm:$0xff]  ;;  %v3850_v13 = vmov 0.0   ;;  %vm3851_vm0 = vmmov 0  }
   0x4   :  { %v42_v3 = vld [vmem:[%s5321_s1] sm:$0xff]  ;;  %3643 = vset.pattern.permute.xlu1 %v5331_v4  ;;  %3642 = vset.pattern.permute.xlu0 %v5331_v4  ;;  %v43_v6 = vld [vmem:[%s5321_s1 + $0x8] sm:$0xff]  ;;  %v44_v8 = vld [vmem:[%s5321_s1 + $0x10] sm:$0xff] }
   0x5   :  { %90 = vperm.xlu1 %3643, %v83_v2   ;;  %49 = vperm.xlu0 %3642, %v42_v3   ;;  %v86_v9 = vld [vmem:[%s5322_s2 + $0x18] sm:$0xff]  ;;  %v85_v10 = vld [vmem:[%s5322_s2 + $0x10] sm:$0xff]  ;;  %v87_v11 = vld [vmem:[%s5322_s2 + $0x20] sm:$0xff] }
   0x6   :  { %3486 = vmatprep.subr.bf16.mxu1 %v5331_v4  ;;  %v46_v12 = vld [vmem:[%s5321_s1 + $0x20] sm:$0xff]  ;;  %3380 = vmatprep.subr.bf16.mxu0 %v3850_v13  ;;  %v182_v14 = vld [vmem:[%s5324_s4 + $0x8] sm:$0xff]  ;;  %v184_v16 = vld [vmem:[%s5324_s4 + $0x18] sm:$0xff] }
   0x7   :  { %v181_v15 = vld [vmem:[%s5324_s4] sm:$0xff]  ;;  %v183_v17 = vld [vmem:[%s5324_s4 + $0x10] sm:$0xff]  ;;  %v186_v18 = vld [vmem:[%s5324_s4 + $0x28] sm:$0xff]  ;;  %3386 = vmatprep.mubr.msk.bf16.mxu0 %vm3851_vm0, %v3850_v13 }
   0x8   :  { %v185_v19 = vld [vmem:[%s5324_s4 + $0x20] sm:$0xff]  ;;  %v188_v20 = vld [vmem:[%s5324_s4 + $0x38] sm:$0xff]  ;;  %v187_v21 = vld [vmem:[%s5324_s4 + $0x30] sm:$0xff] }
   0x9   :  { %95 = vperm.xlu1 %3643, %v84_v5   ;;  %54 = vperm.xlu0 %3642, %v43_v6   ;;  %v190_v22 = vld [vmem:[%s5324_s4 + $0x48] sm:$0xff]  ;;  %v189_v23 = vld [vmem:[%s5324_s4 + $0x40] sm:$0xff]  ;;  %v192_v24 = vld [vmem:[%s5324_s4 + $0x58] sm:$0xff] }
   0xa   :  { %v191_v25 = vld [vmem:[%s5324_s4 + $0x50] sm:$0xff]  ;;  %v194_v26 = vld [vmem:[%s5324_s4 + $0x68] sm:$0xff]  ;;  %v193_v27 = vld [vmem:[%s5324_s4 + $0x60] sm:$0xff] }
   0xb   :  { %v196_v28 = vld [vmem:[%s5324_s4 + $0x78] sm:$0xff]  ;;  %v195_v29 = vld [vmem:[%s5324_s4 + $0x70] sm:$0xff]  ;;  %v198_v30 = vld [vmem:[%s5324_s4 + $0x88] sm:$0xff] }
   0xc   :  { %v197_v31 = vld [vmem:[%s5324_s4 + $0x80] sm:$0xff]  ;;  %v200_v32 = vld [vmem:[%s5324_s4 + $0x98] sm:$0xff]  ;;  %v199_v33 = vld [vmem:[%s5324_s4 + $0x90] sm:$0xff] }
   0xd   :  { %64 = vperm.xlu1 %3643, %v45_v7   ;;  %59 = vperm.xlu0 %3642, %v44_v8   ;;  %v202_v34 = vld [vmem:[%s5324_s4 + $0xa8] sm:$0xff]  ;;  %v201_v35 = vld [vmem:[%s5324_s4 + $0xa0] sm:$0xff]  ;;  %v204_v36 = vld [vmem:[%s5324_s4 + $0xb8] sm:$0xff] }
   0xe   :  { %v203_v37 = vld [vmem:[%s5324_s4 + $0xb0] sm:$0xff]  ;;  %v206_v38 = vld [vmem:[%s5324_s4 + $0xc8] sm:$0xff]  ;;  %v205_v39 = vld [vmem:[%s5324_s4 + $0xc0] sm:$0xff] }
   0xf   :  { %v208_v40 = vld [vmem:[%s5324_s4 + $0xd8] sm:$0xff]  ;;  %v207_v41 = vld [vmem:[%s5324_s4 + $0xd0] sm:$0xff]  ;;  %v210_v42 = vld [vmem:[%s5324_s4 + $0xe8] sm:$0xff] }
  0x10   :  { %v209_v43 = vld [vmem:[%s5324_s4 + $0xe0] sm:$0xff]  ;;  %v212_v44 = vld [vmem:[%s5324_s4 + $0xf8] sm:$0xff]  ;;  %v211_v45 = vld [vmem:[%s5324_s4 + $0xf0] sm:$0xff] }
  0x11   :  { %105 = vperm.xlu1 %3643, %v86_v9   ;;  %100 = vperm.xlu0 %3642, %v85_v10   ;;  %v214_v46 = vld [vmem:[%s5324_s4 + $0x108] sm:$0xff]  ;;  %v213_v47 = vld [vmem:[%s5324_s4 + $0x100] sm:$0xff]  ;;  %v216_v48 = vld [vmem:[%s5324_s4 + $0x118] sm:$0xff] }
  0x12   :  { %v215_v49 = vld [vmem:[%s5324_s4 + $0x110] sm:$0xff] }
  0x15   :  { %110 = vperm.xlu1 %3643, %v87_v11   ;;  %69 = vperm.xlu0 %3642, %v46_v12  }
  0x19   :  { %238 = vperm.xlu1 %3643, %v182_v14   ;;  %233 = vperm.xlu0 %3642, %v181_v15  }
  0x1d   :  { %248 = vperm.xlu1 %3643, %v184_v16   ;;  %243 = vperm.xlu0 %3642, %v183_v17  }
  0x21   :  { %258 = vperm.xlu1 %3643, %v186_v18   ;;  %253 = vperm.xlu0 %3642, %v185_v19  }
  0x25   :  { %268 = vperm.xlu1 %3643, %v188_v20   ;;  %263 = vperm.xlu0 %3642, %v187_v21  }
  0x29   :  { %278 = vperm.xlu1 %3643, %v190_v22   ;;  %273 = vperm.xlu0 %3642, %v189_v23  }
  0x2d   :  { %288 = vperm.xlu1 %3643, %v192_v24   ;;  %283 = vperm.xlu0 %3642, %v191_v25  }
  0x31   :  { %298 = vperm.xlu1 %3643, %v194_v26   ;;  %293 = vperm.xlu0 %3642, %v193_v27  }
  0x35   :  { %308 = vperm.xlu1 %3643, %v196_v28   ;;  %303 = vperm.xlu0 %3642, %v195_v29  }
  0x39   :  { %318 = vperm.xlu1 %3643, %v198_v30   ;;  %313 = vperm.xlu0 %3642, %v197_v31  }
  0x3d   :  { %328 = vperm.xlu1 %3643, %v200_v32   ;;  %323 = vperm.xlu0 %3642, %v199_v33  }
  0x41   :  { %338 = vperm.xlu1 %3643, %v202_v34   ;;  %333 = vperm.xlu0 %3642, %v201_v35  }
  0x45   :  { %348 = vperm.xlu1 %3643, %v204_v36   ;;  %343 = vperm.xlu0 %3642, %v203_v37  }
  0x49   :  { %358 = vperm.xlu1 %3643, %v206_v38   ;;  %353 = vperm.xlu0 %3642, %v205_v39  }
  0x4d   :  { %368 = vperm.xlu1 %3643, %v208_v40   ;;  %363 = vperm.xlu0 %3642, %v207_v41  }
  0x51   :  { %378 = vperm.xlu1 %3643, %v210_v42   ;;  %373 = vperm.xlu0 %3642, %v209_v43  }
  0x55   :  { %388 = vperm.xlu1 %3643, %v212_v44   ;;  %383 = vperm.xlu0 %3642, %v211_v45  }
  0x59   :  { %398 = vperm.xlu1 %3643, %v214_v46   ;;  %393 = vperm.xlu0 %3642, %v213_v47  }
  0x5a   :  { %19 = vsyncpa [#allocation5], 0  ;;  %v218_v50 = vld [vmem:[%s5324_s4 + $0x128] sm:$0xff]  ;;  %v217_v51 = vld [vmem:[%s5324_s4 + $0x120] sm:$0xff]  ;;  %vm682_vm1 = vcmask 1043456   ;;  %vm606_vm2 = vcmask 326656  }
  0x5b   :  { %v220_v52 = vld [vmem:[%s5324_s4 + $0x138] sm:$0xff]  ;;  %v219_v53 = vld [vmem:[%s5324_s4 + $0x130] sm:$0xff]  ;;  %v222_v54 = vld [vmem:[%s5324_s4 + $0x148] sm:$0xff]  ;;  %vm1919_vm3 = vcmask 130048  }
  0x5c   :  { %v221_v55 = vld [vmem:[%s5324_s4 + $0x140] sm:$0xff]  ;;  %v224_v56 = vld [vmem:[%s5324_s4 + $0x158] sm:$0xff]  ;;  %v223_v57 = vld [vmem:[%s5324_s4 + $0x150] sm:$0xff] }
  0x5d   :  { %408 = vperm.xlu1 %3643, %v216_v48   ;;  %403 = vperm.xlu0 %3642, %v215_v49   ;;  %v226_v58 = vld [vmem:[%s5324_s4 + $0x168] sm:$0xff]  ;;  %v225_v59 = vld [vmem:[%s5324_s4 + $0x160] sm:$0xff]  ;;  %v228_v60 = vld [vmem:[%s5324_s4 + $0x178] sm:$0xff] }
  0x5e   :  { %v227_v61 = vld [vmem:[%s5324_s4 + $0x170] sm:$0xff]  ;;  %v230_v62 = vld [vmem:[%s5324_s4 + $0x188] sm:$0xff]  ;;  %v229_v63 = vld [vmem:[%s5324_s4 + $0x180] sm:$0xff] }
  0x5f   :  { %v1145_v0 = vld [vmem:[%s5326_s6 + $0x8] sm:$0xff]  ;;  %v1144_v1 = vld [vmem:[%s5326_s6] sm:$0xff]  ;;  %v1147_v2 = vld [vmem:[%s5326_s6 + $0x18] sm:$0xff] }
  0x60   :  { %v1146_v3 = vld [vmem:[%s5326_s6 + $0x10] sm:$0xff]  ;;  %v3176_v5 = vld [vmem:[%s5320_s0] ss:$0 sm:$0xff]  ;;  %v1149_v6 = vld [vmem:[%s5326_s6 + $0x28] sm:$0xff] }
  0x61   :  { %418 = vperm.xlu1 %3643, %v218_v50   ;;  %413 = vperm.xlu0 %3642, %v217_v51   ;;  %v1148_v7 = vld [vmem:[%s5326_s6 + $0x20] sm:$0xff]  ;;  %v1151_v11 = vld [vmem:[%s5326_s6 + $0x38] sm:$0xff]  ;;  %v1150_v12 = vld [vmem:[%s5326_s6 + $0x30] sm:$0xff] }
  0x62   :  { %v1153_v18 = vld [vmem:[%s5326_s6 + $0x48] sm:$0xff]  ;;  %v1152_v19 = vld [vmem:[%s5326_s6 + $0x40] sm:$0xff]  ;;  %v1155_v25 = vld [vmem:[%s5326_s6 + $0x58] sm:$0xff] }
  0x63   :  { %v1154_v26 = vld [vmem:[%s5326_s6 + $0x50] sm:$0xff]  ;;  %v1157_v36 = vld [vmem:[%s5326_s6 + $0x68] sm:$0xff]  ;;  %v1156_v37 = vld [vmem:[%s5326_s6 + $0x60] sm:$0xff] }
  0x64   :  { %v1159_v45 = vld [vmem:[%s5326_s6 + $0x78] sm:$0xff]  ;;  %v1158_v46 = vld [vmem:[%s5326_s6 + $0x70] sm:$0xff]  ;;  %v1161_v50 = vld [vmem:[%s5326_s6 + $0x88] sm:$0xff] }
  0x65   :  { %428 = vperm.xlu1 %3643, %v220_v52   ;;  %423 = vperm.xlu0 %3642, %v219_v53   ;;  %v1160_v51 = vld [vmem:[%s5326_s6 + $0x80] sm:$0xff] }
  0x69   :  { %438 = vperm.xlu1 %3643, %v222_v54   ;;  %433 = vperm.xlu0 %3642, %v221_v55   ;;  %v1163_v54 = vld [vmem:[%s5326_s6 + $0x98] sm:$0xff]  ;;  %v1162_v55 = vld [vmem:[%s5326_s6 + $0x90] sm:$0xff] }
  0x6d   :  { %448 = vperm.xlu1 %3643, %v224_v56   ;;  %443 = vperm.xlu0 %3642, %v223_v57   ;;  %v3644_v57 = vld [vmem:[%s5323_s3] sm:$0xff]  }
  0x71   :  { %458 = vperm.xlu1 %3643, %v226_v58   ;;  %453 = vperm.xlu0 %3642, %v225_v59   ;;  %v1165_v58 = vld [vmem:[%s5326_s6 + $0xa8] sm:$0xff]  ;;  %v1164_v59 = vld [vmem:[%s5326_s6 + $0xa0] sm:$0xff] }
  0x75   :  { %468 = vperm.xlu1 %3643, %v228_v60   ;;  %463 = vperm.xlu0 %3642, %v227_v61   ;;  %v1167_v60 = vld [vmem:[%s5326_s6 + $0xb8] sm:$0xff]  ;;  %v1166_v61 = vld [vmem:[%s5326_s6 + $0xb0] sm:$0xff] }
  0x79   :  { %478 = vperm.xlu1 %3643, %v230_v62   ;;  %473 = vperm.xlu0 %3642, %v229_v63   ;;  %v3645_v62 = vld [vmem:[%s5323_s3 + $0x8] sm:$0xff]  }
  0x7d   :  { %1201 = vperm.xlu1 %3643, %v1145_v0   ;;  %1196 = vperm.xlu0 %3642, %v1144_v1   ;;  %v1169_v1 = vld [vmem:[%s5326_s6 + $0xc8] sm:$0xff] }
  0x81   :  { %1211 = vperm.xlu1 %3643, %v1147_v2   ;;  %1206 = vperm.xlu0 %3642, %v1146_v3   ;;  %v1168_v2 = vld [vmem:[%s5326_s6 + $0xc0] sm:$0xff]  ;;  %v1171_v3 = vld [vmem:[%s5326_s6 + $0xd8] sm:$0xff] }
  0x84   :  { %v91_v8 = vpop.permute.xlu1 %90  ;;  %v50_v9 = vpop.permute.xlu0 %49 }
  0x85   :  { %v78_v10 = vmul.f32 %v3176_v5, %v50_v9  ;;  %1221 = vperm.xlu1 %3643, %v1149_v6   ;;  %1216 = vperm.xlu0 %3642, %v1148_v7   ;;  %v1173_v9 = vld [vmem:[%s5326_s6 + $0xe8] sm:$0xff] }
  0x87   :  { %v113_v14 = vadd.f32 %v91_v8, %v78_v10  ;;  %v3646_v8 = vld [vmem:[%s5323_s3 + $0x10] sm:$0xff]   ;;  %v1172_v10 = vld [vmem:[%s5326_s6 + $0xe0] sm:$0xff] }
  0x88   :  { %v96_v15 = vpop.permute.xlu1 %95  ;;  %v55_v16 = vpop.permute.xlu0 %54 }
  0x89   :  { %v79_v17 = vmul.f32 %v3176_v5, %v55_v16  ;;  %1231 = vperm.xlu1 %3643, %v1151_v11   ;;  %1226 = vperm.xlu0 %3642, %v1150_v12   ;;  %v118_v21 = vmul.f32 0.02, %v113_v14  ;;  %v3647_v16 = vld [vmem:[%s5323_s3 + $0x18] sm:$0xff]  }
  0x8b   :  { %v114_v20 = vadd.f32 %v96_v15, %v79_v17  ;;  %v123_v29 = vmax.f32 %v113_v14, %v118_v21  ;;  %v1175_v14 = vld [vmem:[%s5326_s6 + $0xf8] sm:$0xff]  ;;  %v1174_v15 = vld [vmem:[%s5326_s6 + $0xf0] sm:$0xff]  ;;  %v1177_v17 = vld [vmem:[%s5326_s6 + $0x108] sm:$0xff] }
  0x8c   :  { %v65_v22 = vpop.permute.xlu1 %64  ;;  %v60_v23 = vpop.permute.xlu0 %59  ;;  %v1179_v21 = vld [vmem:[%s5326_s6 + $0x118] sm:$0xff] }
  0x8d   :  { %1241 = vperm.xlu1 %3643, %v1153_v18   ;;  %1236 = vperm.xlu0 %3642, %v1152_v19   ;;  %v119_v24 = vmul.f32 0.02, %v114_v20  ;;  %v81_v27 = vmul.f32 %v3176_v5, %v65_v22  ;;  %v80_v28 = vmul.f32 %v3176_v5, %v60_v23  ;;  %v1176_v18 = vld [vmem:[%s5326_s6 + $0x100] sm:$0xff]  ;;  %v1178_v22 = vld [vmem:[%s5326_s6 + $0x110] sm:$0xff] }
  0x8e   :  { %v3648_v23 = vld [vmem:[%s5323_s3 + $0x20] sm:$0xff]  }
  0x8f   :  { %v124_v30 = vmax.f32 %v114_v20, %v119_v24 }
  0x90   :  { %v106_v31 = vpop.permute.xlu1 %105  ;;  %v101_v32 = vpop.permute.xlu0 %100 }
  0x91   :  { %v116_v33 = vadd.f32 %v106_v31, %v81_v27  ;;  %v115_v34 = vadd.f32 %v101_v32, %v80_v28  ;;  %1251 = vperm.xlu1 %3643, %v1155_v25   ;;  %1246 = vperm.xlu0 %3642, %v1154_v26   ;;  %v178_v35 = vpack.c.bf16 %v124_v30, %v123_v29  ;;  %v1181_v26 = vld [vmem:[%s5326_s6 + $0x128] sm:$0xff]  ;;  %v1180_v27 = vld [vmem:[%s5326_s6 + $0x120] sm:$0xff]  ;;  %v1183_v28 = vld [vmem:[%s5326_s6 + $0x138] sm:$0xff] }
  0x92   :  { %v1182_v29 = vld [vmem:[%s5326_s6 + $0x130] sm:$0xff]  ;;  %v3649_v32 = vld [vmem:[%s5323_s3 + $0x28] sm:$0xff]  }
  0x93   :  { %v121_v38 = vmul.f32 0.02, %v116_v33  ;;  %v120_v39 = vmul.f32 0.02, %v115_v34  ;;  %3381 = vmatpush3.bf16.msra.mxu0 %v178_v35 }
  0x94   :  { %v70_v40 = vpop.permute.xlu0 %69  ;;  %3382 = vmatprep.subr.bf16.mxu0 %v3850_v13  ;;  %v111_v44 = vpop.permute.xlu1 %110 }
  0x95   :  { %v126_v41 = vmax.f32 %v116_v33, %v121_v38  ;;  %v125_v42 = vmax.f32 %v115_v34, %v120_v39  ;;  %v82_v43 = vmul.f32 %v3176_v5, %v70_v40  ;;  %1261 = vperm.xlu1 %3643, %v1157_v36   ;;  %1256 = vperm.xlu0 %3642, %v1156_v37   ;;  %v1170_v5 = vld [vmem:[%s5326_s6 + $0xd0] sm:$0xff]  ;;  %v1185_v33 = vld [vmem:[%s5326_s6 + $0x148] sm:$0xff]  ;;  %v1184_v34 = vld [vmem:[%s5326_s6 + $0x140] sm:$0xff] }
  0x96   :  { %v1187_v37 = vld [vmem:[%s5326_s6 + $0x158] sm:$0xff]  ;;  %v1186_v38 = vld [vmem:[%s5326_s6 + $0x150] sm:$0xff]  ;;  %v1189_v40 = vld [vmem:[%s5326_s6 + $0x168] sm:$0xff] }
  0x97   :  { %v117_v47 = vadd.f32 %v111_v44, %v82_v43  ;;  %v179_v48 = vpack.c.bf16 %v126_v41, %v125_v42  ;;  %v3650_v39 = vld [vmem:[%s5323_s3 + $0x30] sm:$0xff]   ;;  %v1188_v41 = vld [vmem:[%s5326_s6 + $0x160] sm:$0xff]  ;;  %v1191_v44 = vld [vmem:[%s5326_s6 + $0x178] sm:$0xff] }
  0x98   :  { %v4187_v63 = vpop.permute.xlu1 %238  ;;  %v4189_v0 = vpop.permute.xlu0 %233 }
  0x99   :  { %v122_v49 = vmul.f32 0.02, %v117_v47  ;;  %1271 = vperm.xlu1 %3643, %v1159_v45   ;;  %1266 = vperm.xlu0 %3642, %v1158_v46   ;;  %v1190_v45 = vld [vmem:[%s5326_s6 + $0x170] sm:$0xff]  ;;  %v3651_v46 = vld [vmem:[%s5323_s3 + $0x38] sm:$0xff]  }
  0x9a   :  { %3383 = vmatpush3.bf16.msra.mxu0 %v179_v48 }
  0x9b   :  { %3384 = vmatprep.subr.bf16.mxu0 %v3850_v13  ;;  %v127_v52 = vmax.f32 %v117_v47, %v122_v49  ;;  %v2721_v49 = vld [vmem:[%s5327_s7] sm:$0xff] }
  0x9c   :  { %v4206_v6 = vpop.permute.xlu1 %248  ;;  %v4208_v7 = vpop.permute.xlu0 %243 }
  0x9d   :  { %1281 = vperm.xlu1 %3643, %v1161_v50   ;;  %1276 = vperm.xlu0 %3642, %v1160_v51   ;;  %v180_v53 = vpack.c.bf16 %v127_v52, %v127_v52  ;;  %v1192_v50 = vld [vmem:[%s5326_s6 + $0x180] sm:$0xff]  ;;  %v2723_v51 = vld [vmem:[%s5327_s7 + $0x10] sm:$0xff]  ;;  %v2722_v52 = vld [vmem:[%s5327_s7 + $0x8] sm:$0xff] }
  0x9f   :  { %v684_v56 = vsel %vm682_vm1, %v180_v53, 0 }
  0xa0   :  { %3385 = vmatpush3.bf16.msra.mxu0 %v684_v56  ;;  %v4222_v11 = vpop.permute.xlu1 %258  ;;  %v4224_v12 = vpop.permute.xlu0 %253  ;;  %v2725_v56 = vld [vmem:[%s5327_s7 + $0x20] sm:$0xff] }
  0xa1   :  { %1291 = vperm.xlu1 %3643, %v1163_v54   ;;  %1286 = vperm.xlu0 %3642, %v1162_v55   ;;  %v3652_v55 = vld [vmem:[%s5323_s3 + $0x40] sm:$0xff]  }
  0xa2   :  { %1995 = vmatprep.subr.bf16.mxu0 %v5331_v4 }
  0xa3   :  { %3387 = vmatmul.mubr.msk.bf16.vlgmr.msra.gmra.mrb[0].mxu0 %vm606_vm2, %v3644_v57  ;;  %v2724_v57 = vld [vmem:[%s5327_s7 + $0x18] sm:$0xff] }
  0xa4   :  { %3390 = vmatprep.mubr.msk.bf16.mxu0 %vm3851_vm0, %v3850_v13  ;;  %v4241_v19 = vpop.permute.xlu1 %268  ;;  %v4243_v20 = vpop.permute.xlu0 %263 }
  0xa5   :  { %1301 = vperm.xlu1 %3643, %v1165_v58   ;;  %1296 = vperm.xlu0 %3642, %v1164_v59  }
  0xa8   :  { %v4257_v24 = vpop.permute.xlu1 %278  ;;  %v4259_v25 = vpop.permute.xlu0 %273 }
  0xa9   :  { %1311 = vperm.xlu1 %3643, %v1167_v60   ;;  %1306 = vperm.xlu0 %3642, %v1166_v61   ;;  %v2727_v60 = vld [vmem:[%s5327_s7 + $0x30] sm:$0xff]  ;;  %v2726_v61 = vld [vmem:[%s5327_s7 + $0x28] sm:$0xff] }
  0xab   :  { %3391 = vmatmul.mubr.msk.bf16.gmra.mrb[4].mxu0 %vm606_vm2, %v3645_v62  ;;  %v3653_v62 = vld [vmem:[%s5323_s3 + $0x48] sm:$0xff]  }
  0xac   :  { %3394 = vmatprep.mubr.msk.bf16.mxu0 %vm3851_vm0, %v3850_v13  ;;  %v4276_v30 = vpop.permute.xlu1 %288  ;;  %v4278_v31 = vpop.permute.xlu0 %283 }
  0xad   :  { %1321 = vperm.xlu1 %3643, %v1169_v1   ;;  %1316 = vperm.xlu0 %3642, %v1168_v2   ;;  %v2729_v1 = vld [vmem:[%s5327_s7 + $0x40] sm:$0xff]  ;;  %v2728_v2 = vld [vmem:[%s5327_s7 + $0x38] sm:$0xff] }
  0xb0   :  { %v4292_v35 = vpop.permute.xlu1 %298  ;;  %v4294_v36 = vpop.permute.xlu0 %293 }
  0xb1   :  { %1331 = vperm.xlu1 %3643, %v1171_v3   ;;  %1326 = vperm.xlu0 %3642, %v1170_v5  }
  0xb3   :  { %3395 = vmatmul.mubr.msk.bf16.gmra.mrb[8].mxu0 %vm606_vm2, %v3646_v8  ;;  %v2731_v8 = vld [vmem:[%s5327_s7 + $0x50] sm:$0xff] }
  0xb4   :  { %3398 = vmatprep.mubr.msk.bf16.mxu0 %vm3851_vm0, %v3850_v13  ;;  %v4311_v42 = vpop.permute.xlu1 %308  ;;  %v4313_v43 = vpop.permute.xlu0 %303 }
  0xb5   :  { %1341 = vperm.xlu1 %3643, %v1173_v9   ;;  %1336 = vperm.xlu0 %3642, %v1172_v10   ;;  %v2730_v9 = vld [vmem:[%s5327_s7 + $0x48] sm:$0xff]  ;;  %v3654_v10 = vld [vmem:[%s5323_s3 + $0x50] sm:$0xff]  }
  0xb8   :  { %v4327_v47 = vpop.permute.xlu1 %318  ;;  %v4329_v48 = vpop.permute.xlu0 %313 }
  0xb9   :  { %1351 = vperm.xlu1 %3643, %v1175_v14   ;;  %1346 = vperm.xlu0 %3642, %v1174_v15  }
  0xbb   :  { %3399 = vmatmul.mubr.msk.bf16.gmra.mrb[12].mxu0 %vm606_vm2, %v3647_v16  ;;  %v2733_v16 = vld [vmem:[%s5327_s7 + $0x60] sm:$0xff] }
  0xbc   :  { %3402 = vmatprep.mubr.msk.bf16.mxu0 %vm3851_vm0, %v3850_v13  ;;  %v4346_v53 = vpop.permute.xlu1 %328  ;;  %v4348_v54 = vpop.permute.xlu0 %323 }
  0xbd   :  { %1361 = vperm.xlu1 %3643, %v1177_v17   ;;  %1356 = vperm.xlu0 %3642, %v1176_v18   ;;  %v2732_v17 = vld [vmem:[%s5327_s7 + $0x58] sm:$0xff]  ;;  %v2735_v18 = vld [vmem:[%s5327_s7 + $0x70] sm:$0xff] }
  0xc0   :  { %v4362_v58 = vpop.permute.xlu1 %338  ;;  %v4364_v59 = vpop.permute.xlu0 %333 }
  0xc1   :  { %1371 = vperm.xlu1 %3643, %v1179_v21   ;;  %1366 = vperm.xlu0 %3642, %v1178_v22   ;;  %v2734_v21 = vld [vmem:[%s5327_s7 + $0x68] sm:$0xff] }
  0xc3   :  { %3403 = vmatmul.mubr.msk.bf16.gmra.mrb[16].mxu0 %vm606_vm2, %v3648_v23 }
  0xc4   :  { %3406 = vmatprep.mubr.msk.bf16.mxu0 %vm3851_vm0, %v3850_v13  ;;  %v4381_v3 = vpop.permute.xlu1 %348  ;;  %v4383_v5 = vpop.permute.xlu0 %343 }
  0xc5   :  { %1381 = vperm.xlu1 %3643, %v1181_v26   ;;  %1376 = vperm.xlu0 %3642, %v1180_v27   ;;  %v3655_v26 = vld [vmem:[%s5323_s3 + $0x58] sm:$0xff]   ;;  %v2737_v27 = vld [vmem:[%s5327_s7 + $0x80] sm:$0xff] }
  0xc8   :  { %v4397_v14 = vpop.permute.xlu1 %358  ;;  %v4399_v15 = vpop.permute.xlu0 %353 }
  0xc9   :  { %1391 = vperm.xlu1 %3643, %v1183_v28   ;;  %1386 = vperm.xlu0 %3642, %v1182_v29   ;;  %v2736_v28 = vld [vmem:[%s5327_s7 + $0x78] sm:$0xff] }
  0xcb   :  { %3407 = vmatmul.mubr.msk.bf16.gmra.mrb[20].mxu0 %vm606_vm2, %v3649_v32 }
  0xcc   :  { %3410 = vmatprep.mubr.msk.bf16.mxu0 %vm3851_vm0, %v3850_v13  ;;  %v4416_v22 = vpop.permute.xlu1 %368  ;;  %v4418_v23 = vpop.permute.xlu0 %363 }
  0xcd   :  { %1401 = vperm.xlu1 %3643, %v1185_v33   ;;  %1396 = vperm.xlu0 %3642, %v1184_v34   ;;  %v2739_v33 = vld [vmem:[%s5327_s7 + $0x90] sm:$0xff]  ;;  %v2738_v34 = vld [vmem:[%s5327_s7 + $0x88] sm:$0xff] }
  0xd0   :  { %v4432_v29 = vpop.permute.xlu1 %378  ;;  %v4434_v32 = vpop.permute.xlu0 %373 }
  0xd1   :  { %1411 = vperm.xlu1 %3643, %v1187_v37   ;;  %1406 = vperm.xlu0 %3642, %v1186_v38   ;;  %v3656_v37 = vld [vmem:[%s5323_s3 + $0x60] sm:$0xff]  }
  0xd2   :  { %v2741_v38 = vld [vmem:[%s5327_s7 + $0xa0] sm:$0xff] }
  0xd3   :  { %3411 = vmatmul.mubr.msk.bf16.gmra.mrb[24].mxu0 %vm606_vm2, %v3650_v39  ;;  %v2740_v39 = vld [vmem:[%s5327_s7 + $0x98] sm:$0xff] }
  0xd4   :  { %3414 = vmatprep.mubr.msk.bf16.mxu0 %vm3851_vm0, %v3850_v13 }
  0xd5   :  { %1421 = vperm.xlu1 %3643, %v1189_v40   ;;  %1416 = vperm.xlu0 %3642, %v1188_v41   ;;  %v4451_v40 = vpop.permute.xlu1 %388  ;;  %v4453_v41 = vpop.permute.xlu0 %383 }
  0xd9   :  { %1431 = vperm.xlu1 %3643, %v1191_v44   ;;  %1426 = vperm.xlu0 %3642, %v1190_v45   ;;  %v2743_v44 = vld [vmem:[%s5327_s7 + $0xb0] sm:$0xff]  ;;  %v2742_v45 = vld [vmem:[%s5327_s7 + $0xa8] sm:$0xff] }
  0xdb   :  { %3415 = vmatmul.mubr.msk.bf16.gmra.mrb[28].mxu0 %vm606_vm2, %v3651_v46  ;;  %v3657_v46 = vld [vmem:[%s5323_s3 + $0x68] sm:$0xff]  }
  0xdc   :  { %3418 = vmatprep.mubr.msk.bf16.mxu0 %vm3851_vm0, %v3850_v13 }
  0xdd   :  { %2773 = vperm.xlu1 %3643, %v2721_v49   ;;  %1436 = vperm.xlu0 %3642, %v1192_v50   ;;  %v4467_v49 = vpop.permute.xlu1 %398  ;;  %v4469_v50 = vpop.permute.xlu0 %393 }
  0xe1   :  { %2783 = vperm.xlu1 %3643, %v2723_v51   ;;  %2778 = vperm.xlu0 %3642, %v2722_v52   ;;  %v2745_v51 = vld [vmem:[%s5327_s7 + $0xc0] sm:$0xff]  ;;  %v2744_v52 = vld [vmem:[%s5327_s7 + $0xb8] sm:$0xff] }
  0xe3   :  { %3419 = vmatmul.mubr.msk.bf16.gmra.mrb[32].mxu0 %vm606_vm2, %v3652_v55  ;;  %v2747_v55 = vld [vmem:[%s5327_s7 + $0xd0] sm:$0xff] }
  0xe4   :  { %3422 = vmatprep.mubr.msk.bf16.mxu0 %vm3851_vm0, %v3850_v13 }
  0xe5   :  { %2793 = vperm.xlu1 %3643, %v2725_v56   ;;  %2788 = vperm.xlu0 %3642, %v2724_v57   ;;  %v2746_v56 = vld [vmem:[%s5327_s7 + $0xc8] sm:$0xff]  ;;  %v4486_v57 = vpop.permute.xlu1 %408 }
  0xe9   :  { %2803 = vperm.xlu1 %3643, %v2727_v60   ;;  %2798 = vperm.xlu0 %3642, %v2726_v61   ;;  %v4488_v60 = vpop.permute.xlu0 %403  ;;  %v3658_v61 = vld [vmem:[%s5323_s3 + $0x70] sm:$0xff]  }
  0xeb   :  { %3423 = vmatmul.mubr.msk.bf16.gmra.mrb[36].mxu0 %vm606_vm2, %v3653_v62  ;;  %v2749_v62 = vld [vmem:[%s5327_s7 + $0xe0] sm:$0xff] }
  0xec   :  { %3426 = vmatprep.mubr.msk.bf16.mxu0 %vm3851_vm0, %v3850_v13 }
  0xed   :  { %2813 = vperm.xlu1 %3643, %v2729_v1   ;;  %2808 = vperm.xlu0 %3642, %v2728_v2   ;;  %v2748_v1 = vld [vmem:[%s5327_s7 + $0xd8] sm:$0xff]  ;;  %v4502_v2 = vpop.permute.xlu1 %418 }
  0xf1   :  { %2823 = vperm.xlu1 %3643, %v2731_v8   ;;  %2818 = vperm.xlu0 %3642, %v2730_v9   ;;  %v4504_v8 = vpop.permute.xlu0 %413  ;;  %v2751_v9 = vld [vmem:[%s5327_s7 + $0xf0] sm:$0xff] }
  0xf3   :  { %3427 = vmatmul.mubr.msk.bf16.gmra.mrb[40].mxu0 %vm606_vm2, %v3654_v10  ;;  %v2750_v10 = vld [vmem:[%s5327_s7 + $0xe8] sm:$0xff] }
  0xf4   :  { %3430 = vmatprep.mubr.msk.bf16.mxu0 %vm3851_vm0, %v3850_v13 }
  0xf5   :  { %2833 = vperm.xlu1 %3643, %v2733_v16   ;;  %2828 = vperm.xlu0 %3642, %v2732_v17   ;;  %v3659_v16 = vld [vmem:[%s5323_s3 + $0x78] sm:$0xff]   ;;  %v2753_v17 = vld [vmem:[%s5327_s7 + $0x100] sm:$0xff] }
  0xf9   :  { %2843 = vperm.xlu1 %3643, %v2735_v18   ;;  %2838 = vperm.xlu0 %3642, %v2734_v21   ;;  %v2752_v18 = vld [vmem:[%s5327_s7 + $0xf8] sm:$0xff]  ;;  %v4521_v21 = vpop.permute.xlu1 %428 }
  0xfb   :  { %3431 = vmatmul.mubr.msk.bf16.gmra.mrb[44].mxu0 %vm606_vm2, %v3655_v26  ;;  %v4523_v26 = vpop.permute.xlu0 %423 }
  0xfc   :  { %3434 = vmatprep.mubr.msk.bf16.mxu0 %vm3851_vm0, %v3850_v13 }
  0xfd   :  { %2853 = vperm.xlu1 %3643, %v2737_v27   ;;  %2848 = vperm.xlu0 %3642, %v2736_v28   ;;  %v2755_v27 = vld [vmem:[%s5327_s7 + $0x110] sm:$0xff]  ;;  %v2754_v28 = vld [vmem:[%s5327_s7 + $0x108] sm:$0xff] }
 0x101   :  { %2863 = vperm.xlu1 %3643, %v2739_v33   ;;  %2858 = vperm.xlu0 %3642, %v2738_v34   ;;  %v3660_v33 = vld [vmem:[%s5323_s3 + $0x80] sm:$0xff]   ;;  %v4537_v34 = vpop.permute.xlu1 %438 }
 0x103   :  { %3435 = vmatmul.mubr.msk.bf16.gmra.mrb[48].mxu0 %vm606_vm2, %v3656_v37  ;;  %v4539_v37 = vpop.permute.xlu0 %433 }
 0x104   :  { %3438 = vmatprep.mubr.msk.bf16.mxu0 %vm3851_vm0, %v3850_v13 }
 0x105   :  { %2873 = vperm.xlu1 %3643, %v2741_v38   ;;  %2868 = vperm.xlu0 %3642, %v2740_v39   ;;  %v2757_v38 = vld [vmem:[%s5327_s7 + $0x120] sm:$0xff]  ;;  %v2756_v39 = vld [vmem:[%s5327_s7 + $0x118] sm:$0xff] }
 0x109   :  { %2883 = vperm.xlu1 %3643, %v2743_v44   ;;  %2878 = vperm.xlu0 %3642, %v2742_v45   ;;  %v2759_v44 = vld [vmem:[%s5327_s7 + $0x130] sm:$0xff]  ;;  %v2758_v45 = vld [vmem:[%s5327_s7 + $0x128] sm:$0xff] }
 0x10b   :  { %3439 = vmatmul.mubr.msk.bf16.gmra.mrb[52].mxu0 %vm606_vm2, %v3657_v46  ;;  %v4556_v46 = vpop.permute.xlu1 %448 }
 0x10c   :  { %3442 = vmatprep.mubr.msk.bf16.mxu0 %vm3851_vm0, %v3850_v13 }
 0x10d   :  { %2893 = vperm.xlu1 %3643, %v2745_v51   ;;  %2888 = vperm.xlu0 %3642, %v2744_v52   ;;  %v4558_v51 = vpop.permute.xlu0 %443  ;;  %v3661_v52 = vld [vmem:[%s5323_s3 + $0x88] sm:$0xff]  }
 0x111   :  { %2903 = vperm.xlu1 %3643, %v2747_v55   ;;  %2898 = vperm.xlu0 %3642, %v2746_v56   ;;  %v2760_v55 = vld [vmem:[%s5327_s7 + $0x138] sm:$0xff]  ;;  %v1193_v56 = vld [vmem:[%s5326_s6 + $0x188] sm:$0xff] }
 0x113   :  { %3443 = vmatmul.mubr.msk.bf16.gmra.mrb[56].mxu0 %vm606_vm2, %v3658_v61  ;;  %v4572_v61 = vpop.permute.xlu1 %458 }
 0x114   :  { %3446 = vmatprep.mubr.msk.bf16.mxu0 %vm3851_vm0, %v3850_v13 }
 0x115   :  { %2913 = vperm.xlu1 %3643, %v2749_v62   ;;  %2908 = vperm.xlu0 %3642, %v2748_v1   ;;  %v4574_v62 = vpop.permute.xlu0 %453  ;;  %v2762_v1 = vld [vmem:[%s5327_s7 + $0x148] sm:$0xff] }
 0x119   :  { %2923 = vperm.xlu1 %3643, %v2751_v9   ;;  %2918 = vperm.xlu0 %3642, %v2750_v10   ;;  %v2761_v9 = vld [vmem:[%s5327_s7 + $0x140] sm:$0xff]  ;;  %v3662_v10 = vld [vmem:[%s5323_s3 + $0x90] sm:$0xff]  }
 0x11b   :  { %3447 = vmatmul.mubr.msk.bf16.gmra.mrb[60].mxu0 %vm606_vm2, %v3659_v16  ;;  %v2764_v16 = vld [vmem:[%s5327_s7 + $0x158] sm:$0xff] }
 0x11c   :  { %3450 = vmatprep.mubr.msk.bf16.mxu0 %vm3851_vm0, %v3850_v13 }
 0x11d   :  { %2933 = vperm.xlu1 %3643, %v2753_v17   ;;  %2928 = vperm.xlu0 %3642, %v2752_v18   ;;  %v2763_v17 = vld [vmem:[%s5327_s7 + $0x150] sm:$0xff]  ;;  %v4591_v18 = vpop.permute.xlu1 %468 }
 0x121   :  { %2943 = vperm.xlu1 %3643, %v2755_v27   ;;  %2938 = vperm.xlu0 %3642, %v2754_v28   ;;  %v4593_v27 = vpop.permute.xlu0 %463  ;;  %v2766_v28 = vld [vmem:[%s5327_s7 + $0x168] sm:$0xff] }
 0x123   :  { %3451 = vmatmul.mubr.msk.bf16.gmra.mrb[64].mxu0 %vm606_vm2, %v3660_v33  ;;  %v2765_v33 = vld [vmem:[%s5327_s7 + $0x160] sm:$0xff] }
 0x124   :  { %3454 = vmatprep.mubr.msk.bf16.mxu0 %vm3851_vm0, %v3850_v13 }
 0x125   :  { %2953 = vperm.xlu1 %3643, %v2757_v38   ;;  %2948 = vperm.xlu0 %3642, %v2756_v39   ;;  %v3663_v38 = vld [vmem:[%s5323_s3 + $0x98] sm:$0xff]   ;;  %v4607_v39 = vpop.permute.xlu1 %478 }
 0x126   :  { %5333 = vst [vmem:[#allocation7_spill] sm:$0xff] %v4607_v39  ;;  %v5338_v39 = vmov 0  }
 0x129   :  { %2963 = vperm.xlu1 %3643, %v2759_v44   ;;  %2958 = vperm.xlu0 %3642, %v2758_v45   ;;  %v4609_v44 = vpop.permute.xlu0 %473  ;;  %v2768_v45 = vld [vmem:[%s5327_s7 + $0x178] sm:$0xff] }
 0x12b   :  { %3455 = vmatmul.mubr.msk.bf16.gmra.mrb[68].mxu0 %vm606_vm2, %v3661_v52  ;;  %v2767_v52 = vld [vmem:[%s5327_s7 + $0x170] sm:$0xff] }
 0x12c   :  { %3458 = vmatprep.mubr.msk.bf16.mxu0 %vm3851_vm0, %v3850_v13 }
 0x12d   :  { %2968 = vperm.xlu1 %3643, %v2760_v55   ;;  %1441 = vperm.xlu0 %3642, %v1193_v56   ;;  %v2770_v55 = vld [vmem:[%s5327_s7 + $0x188] sm:$0xff]  ;;  %v2769_v56 = vld [vmem:[%s5327_s7 + $0x180] sm:$0xff] }
 0x131   :  { %2978 = vperm.xlu1 %3643, %v2762_v1   ;;  %2973 = vperm.xlu0 %3642, %v2761_v9   ;;  %v4626_v1 = vpop.permute.xlu1 %1201  ;;  %v4628_v9 = vpop.permute.xlu0 %1196 }
 0x132   :  { %5334 = vst [vmem:[#allocation8_spill] sm:$0xff] %v4626_v1  ;;  %5335 = vst [vmem:[#allocation9_spill] sm:$0xff] %v4628_v9 }
 0x133   :  { %3459 = vmatmul.mubr.msk.bf16.gmra.mrb[72].mxu0 %vm606_vm2, %v3662_v10  ;;  %v3664_v10 = vld [vmem:[%s5323_s3 + $0xa0] sm:$0xff]  }
 0x134   :  { %3462 = vmatprep.mubr.msk.bf16.mxu0 %vm3851_vm0, %v3850_v13 }
 0x135   :  { %2988 = vperm.xlu1 %3643, %v2764_v16   ;;  %2983 = vperm.xlu0 %3642, %v2763_v17   ;;  %v3145_v16 = vld [vmem:[#allocation3] sm:$0x1]  ;;  %v3132_v17 = vld [vmem:[#allocation2] sm:$0x1] }
 0x139   :  { %2998 = vperm.xlu1 %3643, %v2766_v28   ;;  %2993 = vperm.xlu0 %3642, %v2765_v33   ;;  %v4636_v28 = vpop.permute.xlu1 %1211  ;;  %v4638_v33 = vpop.permute.xlu0 %1206 }
 0x13a   :  { %5336 = vst [vmem:[#allocation10_spill] sm:$0xff] %v4636_v28  ;;  %5337 = vst [vmem:[#allocation11_spill] sm:$0xff] %v4638_v33 }
 0x13b   :  { %3463 = vmatmul.mubr.msk.bf16.gmra.mrb[76].mxu0 %vm606_vm2, %v3663_v38  ;;  %v3665_v38 = vld [vmem:[%s5323_s3 + $0xa8] sm:$0xff]  }
 0x13c   :  { %3466 = vmatprep.mubr.msk.bf16.mxu0 %vm3851_vm0, %v3850_v13 }
 0x13d   :  { %3008 = vperm.xlu1 %3643, %v2768_v45   ;;  %3003 = vperm.xlu0 %3642, %v2767_v52   ;;  %v3666_v45 = vld [vmem:[%s5323_s3 + $0xb0] sm:$0xff]   ;;  %v3667_v52 = vld [vmem:[%s5323_s3 + $0xb8] sm:$0xff]  }
 0x141   :  { %3018 = vperm.xlu1 %3643, %v2770_v55   ;;  %3013 = vperm.xlu0 %3642, %v2769_v56   ;;  %v3668_v55 = vld [vmem:[%s5323_s3 + $0xc0] sm:$0xff]  }
 0x143   :  { %3467 = vmatmul.mubr.msk.bf16.gmra.mrb[80].mxu0 %vm606_vm2, %v3664_v10 }
 0x144   :  { %3470 = vmatprep.mubr.msk.bf16.mxu0 %vm3851_vm0, %v3850_v13 }
 0x145   :  { %3148 = vperm.xlu1 %3643, %v3145_v16   ;;  %3135 = vperm.xlu0 %3642, %v3132_v17  }
 0x14b   :  { %3471 = vmatmul.mubr.msk.bf16.gmra.mrb[84].mxu0 %vm606_vm2, %v3665_v38 }
 0x14c   :  { %3474 = vmatprep.mubr.msk.bf16.mxu0 %vm3851_vm0, %v3850_v13 }
 0x153   :  { %3475 = vmatmul.mubr.msk.bf16.gmra.mrb[88].mxu0 %vm606_vm2, %v3666_v45 }
 0x154   :  { %3478 = vmatprep.mubr.msk.bf16.mxu0 %vm3851_vm0, %v3850_v13 }
 0x15b   :  { %3479 = vmatmul.mubr.msk.bf16.gmra.mrb[92].mxu0 %vm606_vm2, %v3667_v52  ;;  %v3671_v52 = vld [vmem:[%s5325_s5 + $0x4] ss:$16 sps:$4 sm:$0xff]  }
 0x15c   :  { %3482 = vmatprep.mubr.msk.bf16.mxu0 %vm3851_vm0, %v3850_v13  ;;  %v3674_v13 = vld [vmem:[%s5325_s5 + $0x1e4] ss:$16 sps:$4 sm:$0xff]  }
 0x15d   :  { %2147 = vmatprep.mubr.bf16.mxu1 %v3674_v13 }
 0x163   :  { %3483 = vmatmul.mubr.msk.bf16.gmra.mrb[96].mxu0 %vm606_vm2, %v3668_v55 }
 0x164   :  { %2027 = vmatprep.mubr.bf16.mxu0 %v3671_v52 }
 0x176   :  { %v720_v56 = vpop.f32.mrb[0].mxu0 }
 0x177   :  { %v721_v10 = vadd.f32 %v720_v56, %v4189_v0  ;;  %v3388_v16 = vpop.f32.mrb[1].mxu0 }
 0x178   :  { %v723_v38 = vpop.f32.mrb[2].mxu0 }
 0x179   :  { %v919_v17 = vmul.f32 0.02, %v721_v10  ;;  %v724_v45 = vadd.f32 %v723_v38, %v4187_v63  ;;  %v3389_v4 = vpop.f32.mrb[3].mxu0 }
 0x17b   :  { %v920_v28 = vmul.f32 0.02, %v724_v45  ;;  %v969_v55 = vmax.f32 %v721_v10, %v919_v17 }
 0x17d   :  { %v970_v33 = vmax.f32 %v724_v45, %v920_v28 }
 0x17e   :  { %v728_v0 = vpop.f32.mrb[4].mxu0 }
 0x17f   :  { %v729_v56 = vadd.f32 %v728_v0, %v4208_v7  ;;  %v3392_v16 = vpop.f32.mrb[5].mxu0  ;;  %v1119_v1 = vpack.c.bf16 %v970_v33, %v969_v55 }
 0x180   :  { %v731_v63 = vpop.f32.mrb[6].mxu0 }
 0x181   :  { %v921_v4 = vmul.f32 0.02, %v729_v56  ;;  %v732_v38 = vadd.f32 %v731_v63, %v4206_v6  ;;  %v3393_v9 = vpop.f32.mrb[7].mxu0  ;;  %1996 = vmatpush1.bf16.msra.mxu0 %v1119_v1  ;;  %3502 = vmatpush1.bf16.msra.mxu1 %v1119_v1 }
 0x182   :  { %1997 = vmatprep.subr.bf16.mxu0 %v5338_v39  ;;  %3487 = vmatprep.subr.bf16.mxu1 %v5338_v39 }
 0x183   :  { %v922_v52 = vmul.f32 0.02, %v732_v38  ;;  %v971_v13 = vmax.f32 %v729_v56, %v921_v4 }
 0x185   :  { %v972_v10 = vmax.f32 %v732_v38, %v922_v52 }
 0x186   :  { %v736_v28 = vpop.f32.mrb[8].mxu0 }
 0x187   :  { %v737_v17 = vadd.f32 %v736_v28, %v4224_v12  ;;  %v3396_v7 = vpop.f32.mrb[9].mxu0  ;;  %v1120_v45 = vpack.c.bf16 %v972_v10, %v971_v13 }
 0x188   :  { %v739_v33 = vpop.f32.mrb[10].mxu0 }
 0x189   :  { %v923_v55 = vmul.f32 0.02, %v737_v17  ;;  %v740_v0 = vadd.f32 %v739_v33, %v4222_v11  ;;  %v3397_v6 = vpop.f32.mrb[11].mxu0  ;;  %1998 = vmatpush1.bf16.msra.mxu0 %v1120_v45  ;;  %3503 = vmatpush1.bf16.msra.mxu1 %v1120_v45 }
 0x18a   :  { %1999 = vmatprep.subr.bf16.mxu0 %v5338_v39  ;;  %3488 = vmatprep.subr.bf16.mxu1 %v5338_v39 }
 0x18b   :  { %v924_v1 = vmul.f32 0.02, %v740_v0  ;;  %v973_v9 = vmax.f32 %v737_v17, %v923_v55 }
 0x18d   :  { %v974_v56 = vmax.f32 %v740_v0, %v924_v1 }
 0x18e   :  { %v744_v16 = vpop.f32.mrb[12].mxu0 }
 0x18f   :  { %v745_v63 = vadd.f32 %v744_v16, %v4243_v20  ;;  %v3400_v12 = vpop.f32.mrb[13].mxu0  ;;  %v1121_v4 = vpack.c.bf16 %v974_v56, %v973_v9 }
 0x190   :  { %v747_v38 = vpop.f32.mrb[14].mxu0 }
 0x191   :  { %v925_v52 = vmul.f32 0.02, %v745_v63  ;;  %v748_v13 = vadd.f32 %v747_v38, %v4241_v19  ;;  %v3401_v11 = vpop.f32.mrb[15].mxu0  ;;  %2000 = vmatpush1.bf16.msra.mxu0 %v1121_v4  ;;  %3504 = vmatpush1.bf16.msra.mxu1 %v1121_v4 }
 0x192   :  { %2001 = vmatprep.subr.bf16.mxu0 %v5338_v39  ;;  %3489 = vmatprep.subr.bf16.mxu1 %v5338_v39 }
 0x193   :  { %v926_v10 = vmul.f32 0.02, %v748_v13  ;;  %v975_v28 = vmax.f32 %v745_v63, %v925_v52 }
 0x195   :  { %v976_v17 = vmax.f32 %v748_v13, %v926_v10 }
 0x196   :  { %v752_v7 = vpop.f32.mrb[16].mxu0 }
 0x197   :  { %v753_v45 = vadd.f32 %v752_v7, %v4259_v25  ;;  %v3404_v20 = vpop.f32.mrb[17].mxu0  ;;  %v1122_v33 = vpack.c.bf16 %v976_v17, %v975_v28 }
 0x198   :  { %v755_v55 = vpop.f32.mrb[18].mxu0 }
 0x199   :  { %v927_v0 = vmul.f32 0.02, %v753_v45  ;;  %v756_v6 = vadd.f32 %v755_v55, %v4257_v24  ;;  %v3405_v19 = vpop.f32.mrb[19].mxu0  ;;  %2002 = vmatpush1.bf16.msra.mxu0 %v1122_v33  ;;  %3505 = vmatpush1.bf16.msra.mxu1 %v1122_v33 }
 0x19a   :  { %2003 = vmatprep.subr.bf16.mxu0 %v5338_v39  ;;  %3490 = vmatprep.subr.bf16.mxu1 %v5338_v39 }
 0x19b   :  { %v928_v1 = vmul.f32 0.02, %v756_v6  ;;  %v977_v9 = vmax.f32 %v753_v45, %v927_v0 }
 0x19d   :  { %v978_v56 = vmax.f32 %v756_v6, %v928_v1 }
 0x19e   :  { %v760_v16 = vpop.f32.mrb[20].mxu0 }
 0x19f   :  { %v761_v63 = vadd.f32 %v760_v16, %v4278_v31  ;;  %v3408_v25 = vpop.f32.mrb[21].mxu0  ;;  %v1123_v12 = vpack.c.bf16 %v978_v56, %v977_v9 }
 0x1a0   :  { %v763_v4 = vpop.f32.mrb[22].mxu0 }
 0x1a1   :  { %v929_v38 = vmul.f32 0.02, %v761_v63  ;;  %v764_v52 = vadd.f32 %v763_v4, %v4276_v30  ;;  %v3409_v24 = vpop.f32.mrb[23].mxu0  ;;  %2004 = vmatpush1.bf16.msra.mxu0 %v1123_v12  ;;  %3506 = vmatpush1.bf16.msra.mxu1 %v1123_v12 }
 0x1a2   :  { %2005 = vmatprep.subr.bf16.mxu0 %v5338_v39  ;;  %3491 = vmatprep.subr.bf16.mxu1 %v5338_v39 }
 0x1a3   :  { %v930_v13 = vmul.f32 0.02, %v764_v52  ;;  %v979_v11 = vmax.f32 %v761_v63, %v929_v38 }
 0x1a5   :  { %v980_v10 = vmax.f32 %v764_v52, %v930_v13 }
 0x1a6   :  { %v768_v28 = vpop.f32.mrb[24].mxu0 }
 0x1a7   :  { %v769_v17 = vadd.f32 %v768_v28, %v4294_v36  ;;  %v3412_v31 = vpop.f32.mrb[25].mxu0  ;;  %v1124_v7 = vpack.c.bf16 %v980_v10, %v979_v11 }
 0x1a8   :  { %v771_v45 = vpop.f32.mrb[26].mxu0 }
 0x1a9   :  { %v931_v20 = vmul.f32 0.02, %v769_v17  ;;  %v772_v33 = vadd.f32 %v771_v45, %v4292_v35  ;;  %v3413_v30 = vpop.f32.mrb[27].mxu0  ;;  %2006 = vmatpush1.bf16.msra.mxu0 %v1124_v7  ;;  %3507 = vmatpush1.bf16.msra.mxu1 %v1124_v7 }
 0x1aa   :  { %2007 = vmatprep.subr.bf16.mxu0 %v5338_v39  ;;  %3492 = vmatprep.subr.bf16.mxu1 %v5338_v39 }
 0x1ab   :  { %v932_v55 = vmul.f32 0.02, %v772_v33  ;;  %v981_v0 = vmax.f32 %v769_v17, %v931_v20 }
 0x1ad   :  { %v982_v6 = vmax.f32 %v772_v33, %v932_v55 }
 0x1ae   :  { %v776_v19 = vpop.f32.mrb[28].mxu0 }
 0x1af   :  { %v777_v1 = vadd.f32 %v776_v19, %v4313_v43  ;;  %v3416_v36 = vpop.f32.mrb[29].mxu0  ;;  %v1125_v9 = vpack.c.bf16 %v982_v6, %v981_v0 }
 0x1b0   :  { %v779_v56 = vpop.f32.mrb[30].mxu0 }
 0x1b1   :  { %v933_v16 = vmul.f32 0.02, %v777_v1  ;;  %v780_v63 = vadd.f32 %v779_v56, %v4311_v42  ;;  %v3417_v35 = vpop.f32.mrb[31].mxu0  ;;  %2008 = vmatpush1.bf16.msra.mxu0 %v1125_v9  ;;  %3508 = vmatpush1.bf16.msra.mxu1 %v1125_v9 }
 0x1b2   :  { %2009 = vmatprep.subr.bf16.mxu0 %v5338_v39  ;;  %3493 = vmatprep.subr.bf16.mxu1 %v5338_v39 }
 0x1b3   :  { %v934_v25 = vmul.f32 0.02, %v780_v63  ;;  %v983_v12 = vmax.f32 %v777_v1, %v933_v16 }
 0x1b5   :  { %v984_v4 = vmax.f32 %v780_v63, %v934_v25 }
 0x1b6   :  { %v784_v38 = vpop.f32.mrb[32].mxu0 }
 0x1b7   :  { %v785_v52 = vadd.f32 %v784_v38, %v4329_v48  ;;  %v3420_v43 = vpop.f32.mrb[33].mxu0  ;;  %v1126_v24 = vpack.c.bf16 %v984_v4, %v983_v12 }
 0x1b8   :  { %v787_v13 = vpop.f32.mrb[34].mxu0 }
 0x1b9   :  { %v935_v11 = vmul.f32 0.02, %v785_v52  ;;  %v788_v10 = vadd.f32 %v787_v13, %v4327_v47  ;;  %v3421_v42 = vpop.f32.mrb[35].mxu0  ;;  %2010 = vmatpush1.bf16.msra.mxu0 %v1126_v24  ;;  %3509 = vmatpush1.bf16.msra.mxu1 %v1126_v24 }
 0x1ba   :  { %2011 = vmatprep.subr.bf16.mxu0 %v5338_v39  ;;  %3494 = vmatprep.subr.bf16.mxu1 %v5338_v39 }
 0x1bb   :  { %v936_v28 = vmul.f32 0.02, %v788_v10  ;;  %v985_v17 = vmax.f32 %v785_v52, %v935_v11 }
 0x1bd   :  { %v986_v31 = vmax.f32 %v788_v10, %v936_v28 }
 0x1be   :  { %v792_v7 = vpop.f32.mrb[36].mxu0 }
 0x1bf   :  { %v793_v45 = vadd.f32 %v792_v7, %v4348_v54  ;;  %v3424_v48 = vpop.f32.mrb[37].mxu0  ;;  %v1127_v20 = vpack.c.bf16 %v986_v31, %v985_v17 }
 0x1c0   :  { %v795_v33 = vpop.f32.mrb[38].mxu0 }
 0x1c1   :  { %v937_v30 = vmul.f32 0.02, %v793_v45  ;;  %v796_v55 = vadd.f32 %v795_v33, %v4346_v53  ;;  %v3425_v47 = vpop.f32.mrb[39].mxu0  ;;  %2012 = vmatpush1.bf16.msra.mxu0 %v1127_v20  ;;  %3510 = vmatpush1.bf16.msra.mxu1 %v1127_v20 }
 0x1c2   :  { %2013 = vmatprep.subr.bf16.mxu0 %v5338_v39  ;;  %3495 = vmatprep.subr.bf16.mxu1 %v5338_v39 }
 0x1c3   :  { %v938_v0 = vmul.f32 0.02, %v796_v55  ;;  %v987_v6 = vmax.f32 %v793_v45, %v937_v30 }
 0x1c5   :  { %v988_v19 = vmax.f32 %v796_v55, %v938_v0 }
 0x1c6   :  { %v800_v1 = vpop.f32.mrb[40].mxu0 }
 0x1c7   :  { %v801_v36 = vadd.f32 %v800_v1, %v4364_v59  ;;  %v3428_v54 = vpop.f32.mrb[41].mxu0  ;;  %v1128_v9 = vpack.c.bf16 %v988_v19, %v987_v6 }
 0x1c8   :  { %v803_v56 = vpop.f32.mrb[42].mxu0 }
 0x1c9   :  { %v939_v16 = vmul.f32 0.02, %v801_v36  ;;  %v804_v63 = vadd.f32 %v803_v56, %v4362_v58  ;;  %v3429_v53 = vpop.f32.mrb[43].mxu0  ;;  %2014 = vmatpush1.bf16.msra.mxu0 %v1128_v9  ;;  %3511 = vmatpush1.bf16.msra.mxu1 %v1128_v9 }
 0x1ca   :  { %2015 = vmatprep.subr.bf16.mxu0 %v5338_v39  ;;  %3496 = vmatprep.subr.bf16.mxu1 %v5338_v39 }
 0x1cb   :  { %v940_v35 = vmul.f32 0.02, %v804_v63  ;;  %v989_v25 = vmax.f32 %v801_v36, %v939_v16 }
 0x1cd   :  { %v990_v12 = vmax.f32 %v804_v63, %v940_v35 }
 0x1ce   :  { %v808_v4 = vpop.f32.mrb[44].mxu0 }
 0x1cf   :  { %v1129_v38 = vpack.c.bf16 %v990_v12, %v989_v25  ;;  %v809_v59 = vadd.f32 %v808_v4, %v4383_v5  ;;  %v3432_v52 = vpop.f32.mrb[45].mxu0 }
 0x1d0   :  { %v811_v43 = vpop.f32.mrb[46].mxu0 }
 0x1d1   :  { %v941_v24 = vmul.f32 0.02, %v809_v59  ;;  %v812_v13 = vadd.f32 %v811_v43, %v4381_v3  ;;  %v3433_v58 = vpop.f32.mrb[47].mxu0  ;;  %2016 = vmatpush1.bf16.msra.mxu0 %v1129_v38  ;;  %3512 = vmatpush1.bf16.msra.mxu1 %v1129_v38 }
 0x1d2   :  { %2017 = vmatprep.subr.bf16.mxu0 %v5338_v39  ;;  %3497 = vmatprep.subr.bf16.mxu1 %v5338_v39 }
 0x1d3   :  { %v942_v11 = vmul.f32 0.02, %v812_v13  ;;  %v991_v10 = vmax.f32 %v809_v59, %v941_v24 }
 0x1d5   :  { %v992_v42 = vmax.f32 %v812_v13, %v942_v11 }
 0x1d6   :  { %v816_v28 = vpop.f32.mrb[48].mxu0 }
 0x1d7   :  { %v1130_v17 = vpack.c.bf16 %v992_v42, %v991_v10  ;;  %v817_v31 = vadd.f32 %v816_v28, %v4399_v15  ;;  %v3436_v5 = vpop.f32.mrb[49].mxu0 }
 0x1d8   :  { %v819_v7 = vpop.f32.mrb[50].mxu0  ;;  %v3669_v5 = vld [vmem:[%s5325_s5] ss:$16 sps:$4 sm:$0xff]  }
 0x1d9   :  { %v943_v45 = vmul.f32 0.02, %v817_v31  ;;  %v820_v48 = vadd.f32 %v819_v7, %v4397_v14  ;;  %v3437_v3 = vpop.f32.mrb[51].mxu0  ;;  %2018 = vmatpush1.bf16.msra.mxu0 %v1130_v17  ;;  %3513 = vmatpush1.bf16.msra.mxu1 %v1130_v17  ;;  %v3672_v7 = vld [vmem:[%s5325_s5 + $0x1e0] ss:$16 sps:$4 sm:$0xff]  }
 0x1da   :  { %2019 = vmatprep.subr.bf16.mxu0 %v5338_v39  ;;  %3498 = vmatprep.subr.bf16.mxu1 %v5338_v39 }
 0x1db   :  { %v944_v20 = vmul.f32 0.02, %v820_v48  ;;  %v993_v33 = vmax.f32 %v817_v31, %v943_v45  ;;  %v3675_v45 = vld [vmem:[%s5325_s5 + $0x24] ss:$16 sps:$4 sm:$0xff]  }
 0x1dd   :  { %v994_v30 = vmax.f32 %v820_v48, %v944_v20 }
 0x1de   :  { %v824_v55 = vpop.f32.mrb[52].mxu0 }
 0x1df   :  { %v1131_v47 = vpack.c.bf16 %v994_v30, %v993_v33  ;;  %v825_v0 = vadd.f32 %v824_v55, %v4418_v23  ;;  %v3440_v15 = vpop.f32.mrb[53].mxu0 }
 0x1e0   :  { %v827_v6 = vpop.f32.mrb[54].mxu0 }
 0x1e1   :  { %v945_v19 = vmul.f32 0.02, %v825_v0  ;;  %v828_v1 = vadd.f32 %v827_v6, %v4416_v22  ;;  %v3441_v14 = vpop.f32.mrb[55].mxu0  ;;  %2020 = vmatpush1.bf16.msra.mxu0 %v1131_v47  ;;  %3514 = vmatpush1.bf16.msra.mxu1 %v1131_v47  ;;  %v3679_v6 = vld [vmem:[%s5325_s5 + $0x20] ss:$16 sps:$4 sm:$0xff]  }
 0x1e2   :  { %2021 = vmatprep.subr.bf16.mxu0 %v5338_v39  ;;  %3499 = vmatprep.subr.bf16.mxu1 %v5338_v39  ;;  %v3681_v14 = vld [vmem:[%s5325_s5 + $0x44] ss:$16 sps:$4 sm:$0xff]  }
 0x1e3   :  { %v946_v36 = vmul.f32 0.02, %v828_v1  ;;  %v995_v54 = vmax.f32 %v825_v0, %v945_v19 }
 0x1e5   :  { %v996_v9 = vmax.f32 %v828_v1, %v946_v36  ;;  %v3680_v1 = vld [vmem:[%s5325_s5 + $0x200] ss:$16 sps:$4 sm:$0xff]  }
 0x1e6   :  { %v832_v56 = vpop.f32.mrb[56].mxu0 }
 0x1e7   :  { %v1132_v16 = vpack.c.bf16 %v996_v9, %v995_v54  ;;  %v833_v63 = vadd.f32 %v832_v56, %v4434_v32  ;;  %v3444_v23 = vpop.f32.mrb[57].mxu0 }
 0x1e8   :  { %v835_v53 = vpop.f32.mrb[58].mxu0 }
 0x1e9   :  { %v947_v35 = vmul.f32 0.02, %v833_v63  ;;  %v836_v25 = vadd.f32 %v835_v53, %v4432_v29  ;;  %v3445_v22 = vpop.f32.mrb[59].mxu0  ;;  %2022 = vmatpush1.bf16.msra.mxu0 %v1132_v16  ;;  %3515 = vmatpush1.bf16.msra.mxu1 %v1132_v16 }
 0x1ea   :  { %2023 = vmatprep.subr.bf16.mxu0 %v5338_v39  ;;  %3500 = vmatprep.subr.bf16.mxu1 %v5338_v39 }
 0x1eb   :  { %v948_v12 = vmul.f32 0.02, %v836_v25  ;;  %v997_v4 = vmax.f32 %v833_v63, %v947_v35 }
 0x1ed   :  { %v998_v38 = vmax.f32 %v836_v25, %v948_v12  ;;  %v3685_v25 = vld [vmem:[%s5325_s5 + $0x40] ss:$16 sps:$4 sm:$0xff]  }
 0x1ee   :  { %v840_v59 = vpop.f32.mrb[60].mxu0  ;;  %v3686_v12 = vld [vmem:[%s5325_s5 + $0x220] ss:$16 sps:$4 sm:$0xff]  }
 0x1ef   :  { %v1133_v52 = vpack.c.bf16 %v998_v38, %v997_v4  ;;  %v841_v43 = vadd.f32 %v840_v59, %v4453_v41  ;;  %v3448_v32 = vpop.f32.mrb[61].mxu0  ;;  %v3687_v4 = vld [vmem:[%s5325_s5 + $0x64] ss:$16 sps:$4 sm:$0xff]  }
 0x1f0   :  { %v843_v24 = vpop.f32.mrb[62].mxu0 }
 0x1f1   :  { %v949_v13 = vmul.f32 0.02, %v841_v43  ;;  %v844_v58 = vadd.f32 %v843_v24, %v4451_v40  ;;  %v3449_v29 = vpop.f32.mrb[63].mxu0  ;;  %2024 = vmatpush1.bf16.msra.mxu0 %v1133_v52  ;;  %3516 = vmatpush1.bf16.msra.mxu1 %v1133_v52 }
 0x1f2   :  { %2025 = vmatprep.subr.bf16.mxu0 %v5338_v39  ;;  %3501 = vmatprep.subr.bf16.mxu1 %v5338_v39 }
 0x1f3   :  { %v950_v11 = vmul.f32 0.02, %v844_v58  ;;  %v999_v10 = vmax.f32 %v841_v43, %v949_v13 }
 0x1f5   :  { %v1000_v42 = vmax.f32 %v844_v58, %v950_v11  ;;  %v3691_v11 = vld [vmem:[%s5325_s5 + $0x60] ss:$16 sps:$4 sm:$0xff]  }
 0x1f6   :  { %v848_v28 = vpop.f32.mrb[64].mxu0 }
 0x1f7   :  { %v1134_v17 = vpack.c.bf16 %v1000_v42, %v999_v10  ;;  %v849_v31 = vadd.f32 %v848_v28, %v4469_v50  ;;  %v3452_v41 = vpop.f32.mrb[65].mxu0  ;;  %v3677_v50 = vld [vmem:[%s5325_s5 + $0x204] ss:$16 sps:$4 sm:$0xff]   ;;  %v3692_v42 = vld [vmem:[%s5325_s5 + $0x240] ss:$16 sps:$4 sm:$0xff]  }
 0x1f8   :  { %v851_v40 = vpop.f32.mrb[66].mxu0  ;;  %v3693_v28 = vld [vmem:[%s5325_s5 + $0x84] ss:$16 sps:$4 sm:$0xff]  }
 0x1f9   :  { %v951_v48 = vmul.f32 0.02, %v849_v31  ;;  %v852_v3 = vadd.f32 %v851_v40, %v4467_v49  ;;  %v3453_v20 = vpop.f32.mrb[67].mxu0  ;;  %2026 = vmatpush1.bf16.msra.mxu0 %v1134_v17  ;;  %3517 = vmatpush1.bf16.msra.mxu1 %v1134_v17 }
 0x1fa   :  { %2228 = vmatprep.subr.bf16.mxu1 %v5338_v39  ;;  %v3697_v20 = vld [vmem:[%s5325_s5 + $0x80] ss:$16 sps:$4 sm:$0xff]  }
 0x1fb   :  { %v952_v33 = vmul.f32 0.02, %v852_v3  ;;  %v1001_v30 = vmax.f32 %v849_v31, %v951_v48 }
 0x1fc   :  { %2028 = vmatmul.mubr.bf16.vlgmr.msra.gmra.mrb[100].mxu0 %v3669_v5  ;;  %2148 = vmatmul.mubr.bf16.vlgmr.msra.gmra.mrb[0].mxu1 %v3672_v7 }
 0x1fd   :  { %v1002_v55 = vmax.f32 %v852_v3, %v952_v33  ;;  %2035 = vmatprep.mubr.bf16.mxu0 %v3675_v45  ;;  %2155 = vmatprep.mubr.bf16.mxu1 %v3677_v50  ;;  %v3698_v33 = vld [vmem:[%s5325_s5 + $0x260] ss:$16 sps:$4 sm:$0xff]  }
 0x1fe   :  { %v856_v47 = vpop.f32.mrb[68].mxu0 }
 0x1ff   :  { %v1135_v0 = vpack.c.bf16 %v1002_v55, %v1001_v30  ;;  %v857_v49 = vadd.f32 %v856_v47, %v4488_v60  ;;  %v3456_v15 = vpop.f32.mrb[69].mxu0  ;;  %v3683_v60 = vld [vmem:[%s5325_s5 + $0x224] ss:$16 sps:$4 sm:$0xff]  }
 0x200   :  { %v859_v19 = vpop.f32.mrb[70].mxu0  ;;  %v3699_v30 = vld [vmem:[%s5325_s5 + $0xa4] ss:$16 sps:$4 sm:$0xff]  }
 0x201   :  { %v953_v36 = vmul.f32 0.02, %v857_v49  ;;  %v860_v54 = vadd.f32 %v859_v19, %v4486_v57  ;;  %v3457_v9 = vpop.f32.mrb[71].mxu0  ;;  %2229 = vmatpush1.bf16.msra.mxu1 %v1135_v0 }
 0x202   :  { %2230 = vmatprep.subr.bf16.mxu1 %v5338_v39  ;;  %v3704_v9 = vld [vmem:[%s5325_s5 + $0x280] ss:$16 sps:$4 sm:$0xff]  }
 0x203   :  { %v954_v56 = vmul.f32 0.02, %v860_v54  ;;  %v1003_v16 = vmax.f32 %v857_v49, %v953_v36  ;;  %v3703_v36 = vld [vmem:[%s5325_s5 + $0xa0] ss:$16 sps:$4 sm:$0xff]  }
 0x204   :  { %2036 = vmatmul.mubr.bf16.gmra.mrb[104].mxu0 %v3679_v6  ;;  %2156 = vmatmul.mubr.bf16.gmra.mrb[4].mxu1 %v3680_v1 }
 0x205   :  { %v1004_v63 = vmax.f32 %v860_v54, %v954_v56  ;;  %2043 = vmatprep.mubr.bf16.mxu0 %v3681_v14  ;;  %2163 = vmatprep.mubr.bf16.mxu1 %v3683_v60  ;;  %v3705_v60 = vld [vmem:[%s5325_s5 + $0xc4] ss:$16 sps:$4 sm:$0xff]  }
 0x206   :  { %v864_v23 = vpop.f32.mrb[72].mxu0 }
 0x207   :  { %v1136_v53 = vpack.c.bf16 %v1004_v63, %v1003_v16  ;;  %v865_v35 = vadd.f32 %v864_v23, %v4504_v8  ;;  %v3460_v57 = vpop.f32.mrb[73].mxu0  ;;  %v3689_v8 = vld [vmem:[%s5325_s5 + $0x244] ss:$16 sps:$4 sm:$0xff]  }
 0x208   :  { %v867_v22 = vpop.f32.mrb[74].mxu0 }
 0x209   :  { %v955_v38 = vmul.f32 0.02, %v865_v35  ;;  %v868_v59 = vadd.f32 %v867_v22, %v4502_v2  ;;  %v3461_v52 = vpop.f32.mrb[75].mxu0  ;;  %2231 = vmatpush1.bf16.msra.mxu1 %v1136_v53 }
 0x20a   :  { %2232 = vmatprep.subr.bf16.mxu1 %v5338_v39 }
 0x20b   :  { %v956_v43 = vmul.f32 0.02, %v868_v59  ;;  %v1005_v32 = vmax.f32 %v865_v35, %v955_v38  ;;  %v3710_v38 = vld [vmem:[%s5325_s5 + $0x2a0] ss:$16 sps:$4 sm:$0xff]  }
 0x20c   :  { %2044 = vmatmul.mubr.bf16.gmra.mrb[108].mxu0 %v3685_v25  ;;  %2164 = vmatmul.mubr.bf16.gmra.mrb[8].mxu1 %v3686_v12  ;;  %v3709_v12 = vld [vmem:[%s5325_s5 + $0xc0] ss:$16 sps:$4 sm:$0xff]  }
 0x20d   :  { %v1006_v24 = vmax.f32 %v868_v59, %v956_v43  ;;  %2051 = vmatprep.mubr.bf16.mxu0 %v3687_v4  ;;  %2171 = vmatprep.mubr.bf16.mxu1 %v3689_v8  ;;  %v3711_v59 = vld [vmem:[%s5325_s5 + $0xe4] ss:$16 sps:$4 sm:$0xff]  }
 0x20e   :  { %v872_v13 = vpop.f32.mrb[76].mxu0 }
 0x20f   :  { %v1137_v58 = vpack.c.bf16 %v1006_v24, %v1005_v32  ;;  %v873_v29 = vadd.f32 %v872_v13, %v4523_v26  ;;  %v3464_v2 = vpop.f32.mrb[77].mxu0  ;;  %v3695_v26 = vld [vmem:[%s5325_s5 + $0x264] ss:$16 sps:$4 sm:$0xff]  }
 0x210   :  { %v875_v10 = vpop.f32.mrb[78].mxu0 }
 0x211   :  { %v957_v17 = vmul.f32 0.02, %v873_v29  ;;  %v876_v31 = vadd.f32 %v875_v10, %v4521_v21  ;;  %v3465_v41 = vpop.f32.mrb[79].mxu0  ;;  %2233 = vmatpush1.bf16.msra.mxu1 %v1137_v58 }
 0x212   :  { %2234 = vmatprep.subr.bf16.mxu1 %v5338_v39 }
 0x213   :  { %v958_v5 = vmul.f32 0.02, %v876_v31  ;;  %v1007_v40 = vmax.f32 %v873_v29, %v957_v17 }
 0x214   :  { %2052 = vmatmul.mubr.bf16.gmra.mrb[112].mxu0 %v3691_v11  ;;  %2172 = vmatmul.mubr.bf16.gmra.mrb[12].mxu1 %v3692_v42  ;;  %v3715_v11 = vld [vmem:[%s5325_s5 + $0xe0] ss:$16 sps:$4 sm:$0xff]  }
 0x215   :  { %v1008_v7 = vmax.f32 %v876_v31, %v958_v5  ;;  %2059 = vmatprep.mubr.bf16.mxu0 %v3693_v28  ;;  %2179 = vmatprep.mubr.bf16.mxu1 %v3695_v26  ;;  %v3716_v42 = vld [vmem:[%s5325_s5 + $0x2c0] ss:$16 sps:$4 sm:$0xff]   ;;  %v3717_v28 = vld [vmem:[%s5325_s5 + $0x104] ss:$16 sps:$4 sm:$0xff]  }
 0x216   :  { %v880_v45 = vpop.f32.mrb[80].mxu0 }
 0x217   :  { %v1138_v48 = vpack.c.bf16 %v1008_v7, %v1007_v40  ;;  %v881_v3 = vadd.f32 %v880_v45, %v4539_v37  ;;  %v3468_v21 = vpop.f32.mrb[81].mxu0  ;;  %v3701_v37 = vld [vmem:[%s5325_s5 + $0x284] ss:$16 sps:$4 sm:$0xff]  }
 0x218   :  { %v883_v50 = vpop.f32.mrb[82].mxu0 }
 0x219   :  { %v959_v55 = vmul.f32 0.02, %v881_v3  ;;  %v884_v47 = vadd.f32 %v883_v50, %v4537_v34  ;;  %2235 = vmatpush1.bf16.msra.mxu1 %v1138_v48  ;;  %v3469_v0 = vpop.f32.mrb[83].mxu0  ;;  %v3723_v50 = vld [vmem:[%s5325_s5 + $0x124] ss:$16 sps:$4 sm:$0xff]  }
 0x21a   :  { %2236 = vmatprep.subr.bf16.mxu1 %v5338_v39 }
 0x21b   :  { %v960_v49 = vmul.f32 0.02, %v884_v47  ;;  %v1009_v15 = vmax.f32 %v881_v3, %v959_v55  ;;  %v3721_v3 = vld [vmem:[%s5325_s5 + $0x100] ss:$16 sps:$4 sm:$0xff]  }
 0x21c   :  { %2060 = vmatmul.mubr.bf16.gmra.mrb[116].mxu0 %v3697_v20  ;;  %2180 = vmatmul.mubr.bf16.gmra.mrb[16].mxu1 %v3698_v33  ;;  %v3722_v20 = vld [vmem:[%s5325_s5 + $0x2e0] ss:$16 sps:$4 sm:$0xff]  }
 0x21d   :  { %v1010_v6 = vmax.f32 %v884_v47, %v960_v49  ;;  %2067 = vmatprep.mubr.bf16.mxu0 %v3699_v30  ;;  %2187 = vmatprep.mubr.bf16.mxu1 %v3701_v37  ;;  %v5339_v30 = vld [vmem:[#allocation7_spill] sm:$0xff] }
 0x21e   :  { %v888_v19 = vpop.f32.mrb[84].mxu0 }
 0x21f   :  { %v1139_v1 = vpack.c.bf16 %v1010_v6, %v1009_v15  ;;  %v889_v14 = vadd.f32 %v888_v19, %v4558_v51  ;;  %v3472_v34 = vpop.f32.mrb[85].mxu0  ;;  %v3707_v51 = vld [vmem:[%s5325_s5 + $0x2a4] ss:$16 sps:$4 sm:$0xff]   ;;  %v3727_v6 = vld [vmem:[%s5325_s5 + $0x120] ss:$16 sps:$4 sm:$0xff]  }
 0x220   :  { %v891_v54 = vpop.f32.mrb[86].mxu0  ;;  %v3728_v19 = vld [vmem:[%s5325_s5 + $0x300] ss:$16 sps:$4 sm:$0xff]  }
 0x221   :  { %v961_v56 = vmul.f32 0.02, %v889_v14  ;;  %v892_v16 = vadd.f32 %v891_v54, %v4556_v46  ;;  %2237 = vmatpush1.bf16.msra.mxu1 %v1139_v1  ;;  %v3473_v63 = vpop.f32.mrb[87].mxu0  ;;  %v3733_v1 = vld [vmem:[%s5325_s5 + $0xc] ss:$16 sps:$4 sm:$0xff]  }
 0x222   :  { %2238 = vmatprep.subr.bf16.mxu1 %v5338_v39  ;;  %v3734_v34 = vld [vmem:[%s5325_s5 + $0x140] ss:$16 sps:$4 sm:$0xff]   ;;  %v3737_v54 = vld [vmem:[%s5325_s5 + $0x2c] ss:$16 sps:$4 sm:$0xff]  }
 0x223   :  { %v962_v23 = vmul.f32 0.02, %v892_v16  ;;  %v1011_v53 = vmax.f32 %v889_v14, %v961_v56  ;;  %v3731_v14 = vld [vmem:[%s5325_s5 + $0x8] ss:$16 sps:$4 sm:$0xff]   ;;  %v3741_v56 = vld [vmem:[%s5325_s5 + $0x184] ss:$16 sps:$4 sm:$0xff]  }
 0x224   :  { %2068 = vmatmul.mubr.bf16.gmra.mrb[120].mxu0 %v3703_v36  ;;  %2188 = vmatmul.mubr.bf16.gmra.mrb[20].mxu1 %v3704_v9  ;;  %v3735_v36 = vld [vmem:[%s5325_s5 + $0x164] ss:$16 sps:$4 sm:$0xff]   ;;  %v3739_v9 = vld [vmem:[%s5325_s5 + $0x160] ss:$16 sps:$4 sm:$0xff]  }
 0x225   :  { %v1012_v35 = vmax.f32 %v892_v16, %v962_v23  ;;  %2075 = vmatprep.mubr.bf16.mxu0 %v3705_v60  ;;  %2195 = vmatprep.mubr.bf16.mxu1 %v3707_v51  ;;  %v3740_v60 = vld [vmem:[%s5325_s5 + $0x28] ss:$16 sps:$4 sm:$0xff]   ;;  %v3743_v16 = vld [vmem:[%s5325_s5 + $0x4c] ss:$16 sps:$4 sm:$0xff]   ;;  %v3745_v63 = vld [vmem:[%s5325_s5 + $0x180] ss:$16 sps:$4 sm:$0xff]  }
 0x226   :  { %v896_v57 = vpop.f32.mrb[88].mxu0  ;;  %v3746_v51 = vld [vmem:[%s5325_s5 + $0x48] ss:$16 sps:$4 sm:$0xff]   ;;  %v3747_v23 = vld [vmem:[%s5325_s5 + $0x1a4] ss:$16 sps:$4 sm:$0xff]  }
 0x227   :  { %v1140_v25 = vpack.c.bf16 %v1012_v35, %v1011_v53  ;;  %v897_v22 = vadd.f32 %v896_v57, %v4574_v62  ;;  %v3476_v46 = vpop.f32.mrb[89].mxu0  ;;  %v3713_v62 = vld [vmem:[%s5325_s5 + $0x2c4] ss:$16 sps:$4 sm:$0xff]   ;;  %v3749_v53 = vld [vmem:[%s5325_s5 + $0x6c] ss:$16 sps:$4 sm:$0xff]  }
 0x228   :  { %v899_v4 = vpop.f32.mrb[90].mxu0  ;;  %v3751_v35 = vld [vmem:[%s5325_s5 + $0x1a0] ss:$16 sps:$4 sm:$0xff]   ;;  %v3752_v57 = vld [vmem:[%s5325_s5 + $0x68] ss:$16 sps:$4 sm:$0xff]  }
 0x229   :  { %v963_v52 = vmul.f32 0.02, %v897_v22  ;;  %v900_v8 = vadd.f32 %v899_v4, %v4572_v61  ;;  %2239 = vmatpush1.bf16.msra.mxu1 %v1140_v25  ;;  %v3477_v43 = vpop.f32.mrb[91].mxu0  ;;  %v3753_v25 = vld [vmem:[%s5325_s5 + $0x1c4] ss:$16 sps:$4 sm:$0xff]  }
 0x22a   :  { %2240 = vmatprep.subr.bf16.mxu1 %v5338_v39  ;;  %v3757_v46 = vld [vmem:[%s5325_s5 + $0x1c0] ss:$16 sps:$4 sm:$0xff]   ;;  %v3759_v4 = vld [vmem:[%s5325_s5 + $0xac] ss:$16 sps:$4 sm:$0xff]   ;;  %v3767_v43 = vld [vmem:[%s5325_s5 + $0xe8] ss:$16 sps:$4 sm:$0xff]  }
 0x22b   :  { %v964_v32 = vmul.f32 0.02, %v900_v8  ;;  %v1013_v24 = vmax.f32 %v897_v22, %v963_v52  ;;  %v3755_v22 = vld [vmem:[%s5325_s5 + $0x8c] ss:$16 sps:$4 sm:$0xff]   ;;  %v3764_v52 = vld [vmem:[%s5325_s5 + $0xc8] ss:$16 sps:$4 sm:$0xff]  }
 0x22c   :  { %2076 = vmatmul.mubr.bf16.gmra.mrb[124].mxu0 %v3709_v12  ;;  %2196 = vmatmul.mubr.bf16.gmra.mrb[24].mxu1 %v3710_v38  ;;  %v3758_v12 = vld [vmem:[%s5325_s5 + $0x88] ss:$16 sps:$4 sm:$0xff]  }
 0x22d   :  { %v1014_v13 = vmax.f32 %v900_v8, %v964_v32  ;;  %2083 = vmatprep.mubr.bf16.mxu0 %v3711_v59  ;;  %2203 = vmatprep.mubr.bf16.mxu1 %v3713_v62  ;;  %v3761_v38 = vld [vmem:[%s5325_s5 + $0xa8] ss:$16 sps:$4 sm:$0xff]   ;;  %v3762_v59 = vld [vmem:[%s5325_s5 + $0xcc] ss:$16 sps:$4 sm:$0xff]  }
 0x22e   :  { %v904_v58 = vpop.f32.mrb[92].mxu0  ;;  %v3765_v8 = vld [vmem:[%s5325_s5 + $0xec] ss:$16 sps:$4 sm:$0xff]   ;;  %v3770_v32 = vld [vmem:[%s5325_s5 + $0x108] ss:$16 sps:$4 sm:$0xff]  }
 0x22f   :  { %v1141_v29 = vpack.c.bf16 %v1014_v13, %v1013_v24  ;;  %v905_v2 = vadd.f32 %v904_v58, %v4593_v27  ;;  %v3480_v61 = vpop.f32.mrb[93].mxu0  ;;  %v3719_v27 = vld [vmem:[%s5325_s5 + $0x2e4] ss:$16 sps:$4 sm:$0xff]   ;;  %v3768_v62 = vld [vmem:[%s5325_s5 + $0x10c] ss:$16 sps:$4 sm:$0xff]  }
 0x230   :  { %v907_v10 = vpop.f32.mrb[94].mxu0  ;;  %v3771_v24 = vld [vmem:[%s5325_s5 + $0x12c] ss:$16 sps:$4 sm:$0xff]   ;;  %v3773_v13 = vld [vmem:[%s5325_s5 + $0x128] ss:$16 sps:$4 sm:$0xff]   ;;  %v4981_v61 = vpop.permute.xlu0 %1216 }
 0x231   :  { %v965_v17 = vmul.f32 0.02, %v905_v2  ;;  %v908_v31 = vadd.f32 %v907_v10, %v4591_v18  ;;  %2241 = vmatpush1.bf16.msra.mxu1 %v1141_v29  ;;  %v3481_v41 = vpop.f32.mrb[95].mxu0  ;;  %v3774_v58 = vld [vmem:[%s5325_s5 + $0x14c] ss:$16 sps:$4 sm:$0xff]  }
 0x232   :  { %2242 = vmatprep.subr.bf16.mxu1 %v5338_v39  ;;  %v3776_v29 = vld [vmem:[%s5325_s5 + $0x148] ss:$16 sps:$4 sm:$0xff]  }
 0x233   :  { %v966_v26 = vmul.f32 0.02, %v908_v31  ;;  %v1015_v5 = vmax.f32 %v905_v2, %v965_v17  ;;  %v3777_v2 = vld [vmem:[%s5325_s5 + $0x16c] ss:$16 sps:$4 sm:$0xff]   ;;  %v3782_v41 = vld [vmem:[%s5325_s5 + $0x188] ss:$16 sps:$4 sm:$0xff]  }
 0x234   :  { %2084 = vmatmul.mubr.bf16.gmra.mrb[128].mxu0 %v3715_v11  ;;  %2204 = vmatmul.mubr.bf16.gmra.mrb[28].mxu1 %v3716_v42  ;;  %v4984_v11 = vpop.permute.xlu1 %1221  ;;  %v4986_v10 = vpop.permute.xlu0 %1226  ;;  %v3779_v42 = vld [vmem:[%s5325_s5 + $0x168] ss:$16 sps:$4 sm:$0xff]  }
 0x235   :  { %v1016_v40 = vmax.f32 %v908_v31, %v966_v26  ;;  %2091 = vmatprep.mubr.bf16.mxu0 %v3717_v28  ;;  %2211 = vmatprep.mubr.bf16.mxu1 %v3719_v27  ;;  %v3780_v28 = vld [vmem:[%s5325_s5 + $0x18c] ss:$16 sps:$4 sm:$0xff]  }
 0x236   :  { %v912_v7 = vpop.f32.mrb[96].mxu0  ;;  %v3783_v27 = vld [vmem:[%s5325_s5 + $0x1ac] ss:$16 sps:$4 sm:$0xff]  }
 0x237   :  { %v1142_v45 = vpack.c.bf16 %v1016_v40, %v1015_v5  ;;  %v913_v48 = vadd.f32 %v912_v7, %v4609_v44  ;;  %v3484_v18 = vpop.f32.mrb[97].mxu0  ;;  %v3725_v44 = vld [vmem:[%s5325_s5 + $0x304] ss:$16 sps:$4 sm:$0xff]   ;;  %v3785_v40 = vld [vmem:[%s5325_s5 + $0x1a8] ss:$16 sps:$4 sm:$0xff]  }
 0x238   :  { %v915_v21 = vpop.f32.mrb[98].mxu0  ;;  %v4994_v17 = vpop.permute.xlu1 %1231 }
 0x239   :  { %v967_v33 = vmul.f32 0.02, %v913_v48  ;;  %v916_v55 = vadd.f32 %v915_v21, %v5339_v30  ;;  %2243 = vmatpush1.bf16.msra.mxu1 %v1142_v45  ;;  %v3485_v47 = vpop.f32.mrb[99].mxu0  ;;  %v4997_v31 = vpop.permute.xlu0 %1236  ;;  %v3786_v45 = vld [vmem:[%s5325_s5 + $0x1cc] ss:$16 sps:$4 sm:$0xff]  }
 0x23a   :  { %2244 = vmatprep.subr.bf16.mxu1 %v5338_v39  ;;  %v3729_v39 = vld [vmem:[%s5325_s5 + $0x144] ss:$16 sps:$4 sm:$0xff]   ;;  %v3788_v21 = vld [vmem:[%s5325_s5 + $0x1c8] ss:$16 sps:$4 sm:$0xff]  }
 0x23b   :  { %v968_v0 = vmul.f32 0.02, %v916_v55  ;;  %v1017_v37 = vmax.f32 %v913_v48, %v967_v33  ;;  %v3791_v30 = vld [vmem:[%s5325_s5 + $0x1e8] ss:$16 sps:$4 sm:$0xff]  }
 0x23c   :  { %2092 = vmatmul.mubr.bf16.gmra.mrb[132].mxu0 %v3721_v3  ;;  %2212 = vmatmul.mubr.bf16.gmra.mrb[32].mxu1 %v3722_v20  ;;  %v5005_v26 = vpop.permute.xlu1 %1241  ;;  %v3789_v20 = vld [vmem:[%s5325_s5 + $0x1ec] ss:$16 sps:$4 sm:$0xff]  }
 0x23d   :  { %v1018_v49 = vmax.f32 %v916_v55, %v968_v0  ;;  %2099 = vmatprep.mubr.bf16.mxu0 %v3723_v50  ;;  %2219 = vmatprep.mubr.bf16.mxu1 %v3725_v44  ;;  %v5007_v5 = vpop.permute.xlu0 %1246  ;;  %v3792_v55 = vld [vmem:[%s5325_s5 + $0x20c] ss:$16 sps:$4 sm:$0xff]   ;;  %v3794_v0 = vld [vmem:[%s5325_s5 + $0x208] ss:$16 sps:$4 sm:$0xff]  }
 0x23f   :  { %v1143_v15 = vpack.c.bf16 %v1018_v49, %v1017_v37  ;;  %v3795_v49 = vld [vmem:[%s5325_s5 + $0x22c] ss:$16 sps:$4 sm:$0xff]  }
 0x240   :  { %v5013_v7 = vpop.permute.xlu1 %1251 }
 0x241   :  { %2245 = vmatpush1.bf16.msra.mxu1 %v1143_v15  ;;  %v5018_v48 = vpop.permute.xlu0 %1256 }
 0x244   :  { %2100 = vmatmul.mubr.bf16.gmra.mrb[136].mxu0 %v3727_v6  ;;  %2220 = vmatmul.mubr.bf16.gmra.mrb[36].mxu1 %v3728_v19  ;;  %v5021_v18 = vpop.permute.xlu1 %1261 }
 0x245   :  { %2107 = vmatprep.mubr.bf16.mxu0 %v3729_v39  ;;  %3327 = vmatprep.mubr.msk.bf16.mxu1 %vm1919_vm3, %v3733_v1  ;;  %v5023_v3 = vpop.permute.xlu0 %1266 }
 0x248   :  { %v5031_v50 = vpop.permute.xlu1 %1271 }
 0x249   :  { %v5034_v33 = vpop.permute.xlu0 %1276 }
 0x24c   :  { %2108 = vmatmul.mubr.bf16.gmra.mrb[140].mxu0 %v3734_v34  ;;  %2261 = vmatmul.mubr.bf16.vlgmr.msra.gmra.mrb[40].mxu1 %v3731_v14  ;;  %v5042_v47 = vpop.permute.xlu1 %1281  ;;  %v3797_v14 = vld [vmem:[%s5325_s5 + $0x228] ss:$16 sps:$4 sm:$0xff]  }
 0x24d   :  { %2115 = vmatprep.mubr.bf16.mxu0 %v3735_v36  ;;  %3328 = vmatprep.mubr.msk.bf16.mxu1 %vm1919_vm3, %v3737_v54  ;;  %v5044_v44 = vpop.permute.xlu0 %1286  ;;  %v3798_v36 = vld [vmem:[%s5325_s5 + $0x24c] ss:$16 sps:$4 sm:$0xff]  }
 0x250   :  { %v5050_v37 = vpop.permute.xlu1 %1291 }
 0x251   :  { %v5055_v15 = vpop.permute.xlu0 %1296 }
 0x254   :  { %2116 = vmatmul.mubr.bf16.gmra.mrb[144].mxu0 %v3739_v9  ;;  %2269 = vmatmul.mubr.bf16.gmra.mrb[44].mxu1 %v3740_v60  ;;  %v5058_v6 = vpop.permute.xlu1 %1301 }
 0x255   :  { %2123 = vmatprep.mubr.bf16.mxu0 %v3741_v56  ;;  %3329 = vmatprep.mubr.msk.bf16.mxu1 %vm1919_vm3, %v3743_v16  ;;  %v5062_v39 = vpop.permute.xlu0 %1306 }
 0x258   :  { %v5072_v9 = vpop.permute.xlu1 %1311 }
 0x259   :  { %5340 = vst [vmem:[#allocation7_spill] sm:$0xff] %v5072_v9  ;;  %v5075_v60 = vpop.permute.xlu0 %1316 }
 0x25a   :  { %5341 = vst [vmem:[#allocation12_spill] sm:$0xff] %v5075_v60 }
 0x25c   :  { %2124 = vmatmul.mubr.bf16.gmra.mrb[148].mxu0 %v3745_v63  ;;  %2277 = vmatmul.mubr.bf16.gmra.mrb[48].mxu1 %v3746_v51  ;;  %v3800_v63 = vld [vmem:[%s5325_s5 + $0x248] ss:$16 sps:$4 sm:$0xff]  }
 0x25d   :  { %2131 = vmatprep.mubr.bf16.mxu0 %v3747_v23  ;;  %3330 = vmatprep.mubr.msk.bf16.mxu1 %vm1919_vm3, %v3749_v53  ;;  %v3801_v23 = vld [vmem:[%s5325_s5 + $0x26c] ss:$16 sps:$4 sm:$0xff]  }
 0x264   :  { %2132 = vmatmul.mubr.bf16.gmra.mrb[152].mxu0 %v3751_v35  ;;  %2285 = vmatmul.mubr.bf16.gmra.mrb[52].mxu1 %v3752_v57  ;;  %v5087_v35 = vpop.permute.xlu1 %1321  ;;  %v5089_v57 = vpop.permute.xlu0 %1326 }
 0x265   :  { %2139 = vmatprep.mubr.bf16.mxu0 %v3753_v25  ;;  %3331 = vmatprep.mubr.msk.bf16.mxu1 %vm1919_vm3, %v3755_v22  ;;  %5342 = vst [vmem:[#allocation13_spill] sm:$0xff] %v5087_v35  ;;  %5343 = vst [vmem:[#allocation14_spill] sm:$0xff] %v5089_v57 }
 0x26c   :  { %2140 = vmatmul.mubr.bf16.gmra.mrb[156].mxu0 %v3757_v46  ;;  %2293 = vmatmul.mubr.bf16.gmra.mrb[56].mxu1 %v3758_v12  ;;  %v3803_v46 = vld [vmem:[%s5325_s5 + $0x268] ss:$16 sps:$4 sm:$0xff]   ;;  %v5097_v12 = vpop.permute.xlu1 %1331 }
 0x26d   :  { %3332 = vmatprep.mubr.msk.bf16.mxu1 %vm1919_vm3, %v3759_v4  ;;  %5344 = vst [vmem:[#allocation15_spill] sm:$0xff] %v5097_v12  ;;  %v5369_v12 = vld [vmem:[#allocation10_spill] sm:$0xff] }
 0x274   :  { %2301 = vmatmul.mubr.bf16.gmra.mrb[60].mxu1 %v3761_v38  ;;  %v3804_v38 = vld [vmem:[%s5325_s5 + $0x28c] ss:$16 sps:$4 sm:$0xff]  }
 0x275   :  { %3333 = vmatprep.mubr.msk.bf16.mxu1 %vm1919_vm3, %v3762_v59  ;;  %v5104_v59 = vpop.permute.xlu0 %1336 }
 0x276   :  { %5345 = vst [vmem:[#allocation16_spill] sm:$0xff] %v5104_v59 }
 0x27c   :  { %2309 = vmatmul.mubr.bf16.gmra.mrb[64].mxu1 %v3764_v52 }
 0x27d   :  { %3334 = vmatprep.mubr.msk.bf16.mxu1 %vm1919_vm3, %v3765_v8  ;;  %v5107_v8 = vpop.permute.xlu1 %1341 }
 0x27e   :  { %5346 = vst [vmem:[#allocation17_spill] sm:$0xff] %v5107_v8  ;;  %v5368_v8 = vld [vmem:[#allocation11_spill] sm:$0xff] }
 0x284   :  { %2317 = vmatmul.mubr.bf16.gmra.mrb[68].mxu1 %v3767_v43 }
 0x285   :  { %3335 = vmatprep.mubr.msk.bf16.mxu1 %vm1919_vm3, %v3768_v62  ;;  %v5111_v62 = vpop.permute.xlu0 %1346 }
 0x286   :  { %5347 = vst [vmem:[#allocation18_spill] sm:$0xff] %v5111_v62 }
 0x28c   :  { %2325 = vmatmul.mubr.bf16.gmra.mrb[72].mxu1 %v3770_v32 }
 0x28d   :  { %3336 = vmatprep.mubr.msk.bf16.mxu1 %vm1919_vm3, %v3771_v24  ;;  %v3806_v24 = vld [vmem:[%s5325_s5 + $0x288] ss:$16 sps:$4 sm:$0xff]  }
 0x294   :  { %2333 = vmatmul.mubr.bf16.gmra.mrb[76].mxu1 %v3773_v13 }
 0x295   :  { %3337 = vmatprep.mubr.msk.bf16.mxu1 %vm1919_vm3, %v3774_v58  ;;  %v3807_v58 = vld [vmem:[%s5325_s5 + $0x2ac] ss:$16 sps:$4 sm:$0xff]  }
 0x29c   :  { %2341 = vmatmul.mubr.bf16.gmra.mrb[80].mxu1 %v3776_v29 }
 0x29d   :  { %3338 = vmatprep.mubr.msk.bf16.mxu1 %vm1919_vm3, %v3777_v2  ;;  %v5121_v2 = vpop.permute.xlu1 %1351 }
 0x29e   :  { %5348 = vst [vmem:[#allocation19_spill] sm:$0xff] %v5121_v2 }
 0x2a4   :  { %2349 = vmatmul.mubr.bf16.gmra.mrb[84].mxu1 %v3779_v42  ;;  %v5124_v42 = vpop.permute.xlu0 %1356 }
 0x2a5   :  { %3339 = vmatprep.mubr.msk.bf16.mxu1 %vm1919_vm3, %v3780_v28  ;;  %5349 = vst [vmem:[#allocation20_spill] sm:$0xff] %v5124_v42 }
 0x2ac   :  { %2357 = vmatmul.mubr.bf16.gmra.mrb[88].mxu1 %v3782_v41 }
 0x2ad   :  { %3340 = vmatprep.mubr.msk.bf16.mxu1 %vm1919_vm3, %v3783_v27  ;;  %v3809_v27 = vld [vmem:[%s5325_s5 + $0x2a8] ss:$16 sps:$4 sm:$0xff]  }
 0x2b4   :  { %2365 = vmatmul.mubr.bf16.gmra.mrb[92].mxu1 %v3785_v40 }
 0x2b5   :  { %3341 = vmatprep.mubr.msk.bf16.mxu1 %vm1919_vm3, %v3786_v45  ;;  %v3810_v45 = vld [vmem:[%s5325_s5 + $0x2cc] ss:$16 sps:$4 sm:$0xff]  }
 0x2bc   :  { %2373 = vmatmul.mubr.bf16.gmra.mrb[96].mxu1 %v3788_v21 }
 0x2bd   :  { %3342 = vmatprep.mubr.msk.bf16.mxu1 %vm1919_vm3, %v3789_v20  ;;  %v5136_v20 = vpop.permute.xlu1 %1361 }
 0x2be   :  { %5350 = vst [vmem:[#allocation21_spill] sm:$0xff] %v5136_v20 }
 0x2c4   :  { %2381 = vmatmul.mubr.bf16.gmra.mrb[0].mxu1 %v3791_v30  ;;  %v5138_v30 = vpop.permute.xlu0 %1366 }
 0x2c5   :  { %3343 = vmatprep.mubr.msk.bf16.mxu1 %vm1919_vm3, %v3792_v55  ;;  %5351 = vst [vmem:[#allocation22_spill] sm:$0xff] %v5138_v30 }
 0x2cc   :  { %2389 = vmatmul.mubr.bf16.gmra.mrb[4].mxu1 %v3794_v0 }
 0x2cd   :  { %3344 = vmatprep.mubr.msk.bf16.mxu1 %vm1919_vm3, %v3795_v49  ;;  %v3812_v49 = vld [vmem:[%s5325_s5 + $0x2c8] ss:$16 sps:$4 sm:$0xff]  }
 0x2cf   :  { %v5060_v19 = vpop.f32.mrb[100].mxu0 }
 0x2d0   :  { %v2031_v1 = vpop.f32.mrb[101].mxu0 }
 0x2d1   :  { %v5067_v34 = vpop.f32.mrb[102].mxu0  ;;  %v5146_v1 = vpop.permute.xlu1 %1371 }
 0x2d2   :  { %v2034_v54 = vpop.f32.mrb[103].mxu0  ;;  %5352 = vst [vmem:[#allocation23_spill] sm:$0xff] %v5146_v1 }
 0x2d3   :  { %v5153_v54 = vpop.permute.xlu0 %1376 }
 0x2d4   :  { %2397 = vmatmul.mubr.bf16.gmra.mrb[8].mxu1 %v3797_v14  ;;  %5353 = vst [vmem:[#allocation24_spill] sm:$0xff] %v5153_v54 }
 0x2d5   :  { %3345 = vmatprep.mubr.msk.bf16.mxu1 %vm1919_vm3, %v3798_v36  ;;  %v3813_v36 = vld [vmem:[%s5325_s5 + $0x2ec] ss:$16 sps:$4 sm:$0xff]  }
 0x2d7   :  { %v5077_v56 = vpop.f32.mrb[104].mxu0 }
 0x2d8   :  { %v2039_v16 = vpop.f32.mrb[105].mxu0  ;;  %v2038_v59 = vadd.f32 %v5077_v56, %v5368_v8 }
 0x2d9   :  { %v5082_v51 = vpop.f32.mrb[106].mxu0 }
 0x2da   :  { %v2042_v53 = vpop.f32.mrb[107].mxu0 }
 0x2db   :  { %v5160_v53 = vpop.permute.xlu0 %1386 }
 0x2dc   :  { %2405 = vmatmul.mubr.bf16.gmra.mrb[12].mxu1 %v3800_v63  ;;  %v5156_v63 = vpop.permute.xlu1 %1381  ;;  %5355 = vst [vmem:[#allocation26_spill] sm:$0xff] %v5160_v53 }
 0x2dd   :  { %3346 = vmatprep.mubr.msk.bf16.mxu1 %vm1919_vm3, %v3801_v23  ;;  %5354 = vst [vmem:[#allocation25_spill] sm:$0xff] %v5156_v63 }
 0x2df   :  { %v5092_v25 = vpop.f32.mrb[108].mxu0 }
 0x2e0   :  { %v2047_v22 = vpop.f32.mrb[109].mxu0 }
 0x2e1   :  { %v5099_v4 = vpop.f32.mrb[110].mxu0 }
 0x2e2   :  { %v2050_v52 = vpop.f32.mrb[111].mxu0 }
 0x2e3   :  { %v3816_v52 = vld [vmem:[%s5325_s5 + $0x30c] ss:$16 sps:$4 sm:$0xff]  }
 0x2e4   :  { %2413 = vmatmul.mubr.bf16.gmra.mrb[16].mxu1 %v3803_v46  ;;  %v3815_v46 = vld [vmem:[%s5325_s5 + $0x2e8] ss:$16 sps:$4 sm:$0xff]  }
 0x2e5   :  { %3347 = vmatprep.mubr.msk.bf16.mxu1 %vm1919_vm3, %v3804_v38 }
 0x2e7   :  { %v5109_v43 = vpop.f32.mrb[112].mxu0 }
 0x2e8   :  { %v2055_v32 = vpop.f32.mrb[113].mxu0 }
 0x2e9   :  { %v5116_v13 = vpop.f32.mrb[114].mxu0 }
 0x2ea   :  { %v2058_v29 = vpop.f32.mrb[115].mxu0 }
 0x2ec   :  { %2421 = vmatmul.mubr.bf16.gmra.mrb[20].mxu1 %v3806_v24  ;;  %v5170_v24 = vpop.permute.xlu1 %1391 }
 0x2ed   :  { %3348 = vmatprep.mubr.msk.bf16.mxu1 %vm1919_vm3, %v3807_v58  ;;  %5356 = vst [vmem:[#allocation27_spill] sm:$0xff] %v5170_v24  ;;  %v5173_v58 = vpop.permute.xlu0 %1396 }
 0x2ee   :  { %5357 = vst [vmem:[#allocation28_spill] sm:$0xff] %v5173_v58 }
 0x2ef   :  { %v5126_v28 = vpop.f32.mrb[116].mxu0 }
 0x2f0   :  { %v2063_v41 = vpop.f32.mrb[117].mxu0 }
 0x2f1   :  { %v5131_v40 = vpop.f32.mrb[118].mxu0 }
 0x2f2   :  { %v2066_v21 = vpop.f32.mrb[119].mxu0 }
 0x2f4   :  { %2429 = vmatmul.mubr.bf16.gmra.mrb[24].mxu1 %v3809_v27  ;;  %v3818_v27 = vld [vmem:[%s5325_s5 + $0x308] ss:$16 sps:$4 sm:$0xff]   ;;  %s3852_s5 = smov [#allocation4]  }
 0x2f5   :  { %3349 = vmatprep.mubr.msk.bf16.mxu1 %vm1919_vm3, %v3810_v45  ;;  %s3168_s27 = sshll.u32 %s3852_s5, 4  ;;  %s3169_s27 = int_to_ptr.vmem [resolvable:$true] %s3168_s27 }
 0x2f6   :  { %s3825_s6 = scalar_lea.vmem %s3169_s27, 16  ;;  %s3829_s28 = scalar_lea.vmem %s3169_s27, 32 }
 0x2f7   :  { %v5141_v55 = vpop.f32.mrb[120].mxu0  ;;  %p3826_p0 = scmp.ne.s32.totalorder %s3169_s27, %s3825_s6  ;;  %p3830_p1 = scmp.lt.s32.totalorder %s3169_s27, %s3169_s27 }
 0x2f8   :  { %v2071_v0 = vpop.f32.mrb[121].mxu0  ;;  %p3831_p2 = scmp.lt.s32.totalorder %s3829_s28, %s3825_s6 }
 0x2f9   :  { %v5148_v14 = vpop.f32.mrb[122].mxu0  ;;  %v5182_v0 = vpop.permute.xlu1 %1401 }
 0x2fa   :  { %v2074_v16 = vpop.f32.mrb[123].mxu0  ;;  %5358 = vst [vmem:[#allocation29_spill] sm:$0xff] %v5182_v0  ;;  %p3832_p3 = por %p3831_p2, %p3830_p1 }
 0x2fc   :  { %2437 = vmatmul.mubr.bf16.gmra.mrb[28].mxu1 %v3812_v49  ;;  %v5184_v49 = vpop.permute.xlu0 %1406  ;;  %p3833_p4 = pnand %p3832_p3, %p3826_p0 }
 0x2fd   :  { %3350 = vmatprep.mubr.msk.bf16.mxu1 %vm1919_vm3, %v3813_v36  ;;  %5359 = vst [vmem:[#allocation30_spill] sm:$0xff] %v5184_v49 }
 0x2ff   :  { %v5158_v23 = vpop.f32.mrb[124].mxu0 }
 0x300   :  { %v2079_v22 = vpop.f32.mrb[125].mxu0 }
 0x301   :  { %v5165_v38 = vpop.f32.mrb[126].mxu0  ;;  %v5188_v22 = vpop.permute.xlu1 %1411 }
 0x302   :  { %v2082_v32 = vpop.f32.mrb[127].mxu0  ;;  %5360 = vst [vmem:[#allocation31_spill] sm:$0xff] %v5188_v22  ;;  %v5366_v22 = vld [vmem:[#allocation9_spill] sm:$0xff] }
 0x303   :  { %v2030_v53 = vadd.f32 %v5060_v19, %v5366_v22 }
 0x304   :  { %2445 = vmatmul.mubr.bf16.gmra.mrb[32].mxu1 %v3815_v46 }
 0x305   :  { %3351 = vmatprep.mubr.msk.bf16.mxu1 %vm1919_vm3, %v3816_v52  ;;  %v5192_v52 = vpop.permute.xlu0 %1416 }
 0x306   :  { %5361 = vst [vmem:[#allocation32_spill] sm:$0xff] %v5192_v52  ;;  %v5367_v52 = vld [vmem:[#allocation8_spill] sm:$0xff] }
 0x307   :  { %v5175_v29 = vpop.f32.mrb[128].mxu0 }
 0x308   :  { %v2087_v41 = vpop.f32.mrb[129].mxu0 }
 0x309   :  { %v5180_v45 = vpop.f32.mrb[130].mxu0  ;;  %v5194_v41 = vpop.permute.xlu1 %1421 }
 0x30a   :  { %v2090_v21 = vpop.f32.mrb[131].mxu0  ;;  %5362 = vst [vmem:[#allocation33_spill] sm:$0xff] %v5194_v41  ;;  %v2033_v41 = vadd.f32 %v5067_v34, %v5367_v52  ;;  %v2041_v34 = vadd.f32 %v5082_v51, %v5369_v12 }
 0x30b   :  { %v5198_v21 = vpop.permute.xlu0 %1426 }
 0x30c   :  { %2453 = vmatmul.mubr.bf16.gmra.mrb[36].mxu1 %v3818_v27  ;;  %5363 = vst [vmem:[#allocation34_spill] sm:$0xff] %v5198_v21 }
 0x30d   :  { %v5202_v49 = vpop.permute.xlu1 %1431 }
 0x30e   :  { %5364 = vst [vmem:[#allocation35_spill] sm:$0xff] %v5202_v49 }
 0x30f   :  { %v5186_v36 = vpop.f32.mrb[132].mxu0 }
 0x310   :  { %v2095_v16 = vpop.f32.mrb[133].mxu0 }
 0x311   :  { %v5190_v46 = vpop.f32.mrb[134].mxu0  ;;  %v5204_v16 = vpop.permute.xlu0 %1436 }
 0x312   :  { %v2098_v32 = vpop.f32.mrb[135].mxu0  ;;  %5365 = vst [vmem:[#allocation36_spill] sm:$0xff] %v5204_v16  ;;  %v2774_v62 = vpop.permute.xlu1 %2773 }
 0x315   :  { %v2779_v19 = vpop.permute.xlu0 %2778 }
 0x316   :  { %v2784_v9 = vpop.permute.xlu1 %2783 }
 0x317   :  { %v5196_v58 = vpop.f32.mrb[136].mxu0 }
 0x318   :  { %v2103_v0 = vpop.f32.mrb[137].mxu0 }
 0x319   :  { %v5200_v24 = vpop.f32.mrb[138].mxu0 }
 0x31a   :  { %v2106_v27 = vpop.f32.mrb[139].mxu0 }
 0x31f   :  { %v5208_v63 = vpop.f32.mrb[140].mxu0  ;;  %v2262_v32 = vpop.f32.mrb[40].mxu1 }
 0x320   :  { %v2263_v54 = vadd.f32 %v2262_v32, %v2030_v53  ;;  %v2111_v1 = vpop.f32.mrb[141].mxu0  ;;  %v2264_v21 = vpop.f32.mrb[41].mxu1 }
 0x321   :  { %v5212_v0 = vpop.f32.mrb[142].mxu0  ;;  %v2265_v30 = vpop.f32.mrb[42].mxu1 }
 0x322   :  { %v2461_v27 = vmul.f32 0.02, %v2263_v54  ;;  %v2266_v20 = vadd.f32 %v2265_v30, %v2033_v41  ;;  %v2267_v49 = vpop.f32.mrb[43].mxu1  ;;  %v2114_v42 = vpop.f32.mrb[143].mxu0 }
 0x324   :  { %v2511_v16 = vmax.f32 %v2263_v54, %v2461_v27  ;;  %v2462_v2 = vmul.f32 0.02, %v2266_v20 }
 0x326   :  { %v2512_v22 = vmax.f32 %v2266_v20, %v2462_v2  ;;  %v2616_v1 = vmul.f32 %v2511_v16, %v2511_v16  ;;  %v3021_v21 = vmul.f32 %v2774_v62, %v2511_v16  ;;  %v2046_v62 = vadd.f32 %v5092_v25, %v4981_v61 }
 0x327   :  { %v5218_v53 = vpop.f32.mrb[144].mxu0  ;;  %v2270_v52 = vpop.f32.mrb[44].mxu1 }
 0x328   :  { %5370 = vst [vmem:[#allocation9_spill] sm:$0xff] %v5218_v53  ;;  %v2561_v32 = vadd.f32 %v2512_v22, %v2511_v16  ;;  %v2617_v30 = vmul.f32 %v2512_v22, %v2512_v22  ;;  %v3022_v49 = vmul.f32 %v2779_v19, %v2512_v22  ;;  %v2119_v42 = vpop.f32.mrb[145].mxu0  ;;  %v2272_v54 = vpop.f32.mrb[45].mxu1  ;;  %v2271_v41 = vadd.f32 %v2270_v52, %v2038_v59 }
 0x329   :  { %v5220_v27 = vpop.f32.mrb[146].mxu0  ;;  %v2273_v2 = vpop.f32.mrb[46].mxu1 }
 0x32a   :  { %v2666_v20 = vadd.f32 %v2617_v30, %v2616_v1  ;;  %v3071_v57 = vadd.f32 %v3022_v49, %v3021_v21  ;;  %v2274_v56 = vadd.f32 %v2273_v2, %v2041_v34  ;;  %v2275_v8 = vpop.f32.mrb[47].mxu1  ;;  %v2122_v35 = vpop.f32.mrb[147].mxu0  ;;  %v2463_v51 = vmul.f32 0.02, %v2271_v41 }
 0x32b   :  { %v2789_v53 = vpop.permute.xlu0 %2788  ;;  %v2049_v34 = vadd.f32 %v5099_v4, %v4984_v11  ;;  %v2794_v11 = vpop.permute.xlu1 %2793 }
 0x32c   :  { %v2464_v12 = vmul.f32 0.02, %v2274_v56  ;;  %v2513_v60 = vmax.f32 %v2271_v41, %v2463_v51 }
 0x32e   :  { %v2514_v16 = vmax.f32 %v2274_v56, %v2464_v12  ;;  %v2562_v19 = vadd.f32 %v2561_v32, %v2513_v60  ;;  %v2618_v22 = vmul.f32 %v2513_v60, %v2513_v60  ;;  %v3023_v59 = vmul.f32 %v2784_v9, %v2513_v60 }
 0x32f   :  { %v5224_v52 = vpop.f32.mrb[148].mxu0  ;;  %v2278_v42 = vpop.f32.mrb[48].mxu1 }
 0x330   :  { %5371 = vst [vmem:[#allocation8_spill] sm:$0xff] %v5224_v52  ;;  %v2619_v1 = vmul.f32 %v2514_v16, %v2514_v16  ;;  %v3024_v35 = vmul.f32 %v2789_v53, %v2514_v16  ;;  %v2279_v21 = vadd.f32 %v2278_v42, %v2046_v62  ;;  %v2127_v30 = vpop.f32.mrb[149].mxu0  ;;  %v2280_v49 = vpop.f32.mrb[49].mxu1  ;;  %v2667_v54 = vadd.f32 %v2666_v20, %v2618_v22 }
 0x331   :  { %v3072_v41 = vadd.f32 %v3071_v57, %v3023_v59  ;;  %v2563_v2 = vadd.f32 %v2562_v19, %v2514_v16  ;;  %v5228_v8 = vpop.f32.mrb[150].mxu0  ;;  %v2281_v61 = vpop.f32.mrb[50].mxu1  ;;  %v2054_v57 = vadd.f32 %v5109_v43, %v4986_v10  ;;  %v2057_v20 = vadd.f32 %v5116_v13, %v4994_v17 }
 0x332   :  { %v2465_v25 = vmul.f32 0.02, %v2279_v21  ;;  %v2282_v32 = vadd.f32 %v2281_v61, %v2049_v34  ;;  %v2283_v9 = vpop.f32.mrb[51].mxu1  ;;  %v2130_v60 = vpop.f32.mrb[151].mxu0  ;;  %v2668_v56 = vadd.f32 %v2667_v54, %v2619_v1 }
 0x333   :  { %v3073_v51 = vadd.f32 %v3072_v41, %v3024_v35  ;;  %v2799_v4 = vpop.permute.xlu0 %2798  ;;  %v2804_v9 = vpop.permute.xlu1 %2803 }
 0x334   :  { %v2515_v12 = vmax.f32 %v2279_v21, %v2465_v25  ;;  %v2466_v52 = vmul.f32 0.02, %v2282_v32 }
 0x336   :  { %v2564_v53 = vadd.f32 %v2563_v2, %v2515_v12  ;;  %v2620_v62 = vmul.f32 %v2515_v12, %v2515_v12  ;;  %v3025_v42 = vmul.f32 %v2794_v11, %v2515_v12  ;;  %v2516_v30 = vmax.f32 %v2282_v32, %v2466_v52 }
 0x337   :  { %v5234_v16 = vpop.f32.mrb[152].mxu0  ;;  %v2286_v19 = vpop.f32.mrb[52].mxu1 }
 0x338   :  { %v2669_v22 = vadd.f32 %v2668_v56, %v2620_v62  ;;  %v3074_v59 = vadd.f32 %v3073_v51, %v3025_v42  ;;  %v2565_v34 = vadd.f32 %v2564_v53, %v2516_v30  ;;  %v2621_v1 = vmul.f32 %v2516_v30, %v2516_v30  ;;  %v2135_v35 = vpop.f32.mrb[153].mxu0  ;;  %v2288_v21 = vpop.f32.mrb[53].mxu1 }
 0x339   :  { %v3026_v49 = vmul.f32 %v2799_v4, %v2516_v30  ;;  %v2287_v54 = vadd.f32 %v2286_v19, %v2054_v57  ;;  %v5236_v41 = vpop.f32.mrb[154].mxu0  ;;  %v2289_v52 = vpop.f32.mrb[54].mxu1  ;;  %v2062_v56 = vadd.f32 %v5126_v28, %v4997_v31  ;;  %v2065_v42 = vadd.f32 %v5131_v40, %v5005_v26 }
 0x33a   :  { %v2670_v2 = vadd.f32 %v2669_v22, %v2621_v1  ;;  %v2290_v61 = vadd.f32 %v2289_v52, %v2057_v20  ;;  %v2291_v10 = vpop.f32.mrb[55].mxu1  ;;  %v2138_v43 = vpop.f32.mrb[155].mxu0 }
 0x33b   :  { %v3075_v25 = vadd.f32 %v3074_v59, %v3026_v49  ;;  %v2467_v17 = vmul.f32 0.02, %v2287_v54  ;;  %v2809_v60 = vpop.permute.xlu0 %2808  ;;  %v2814_v26 = vpop.permute.xlu1 %2813 }
 0x33c   :  { %v2468_v13 = vmul.f32 0.02, %v2290_v61 }
 0x33d   :  { %v2517_v32 = vmax.f32 %v2287_v54, %v2467_v17 }
 0x33e   :  { %v2518_v51 = vmax.f32 %v2290_v61, %v2468_v13 }
 0x33f   :  { %v2566_v12 = vadd.f32 %v2565_v34, %v2517_v32  ;;  %v2622_v11 = vmul.f32 %v2517_v32, %v2517_v32  ;;  %v3027_v4 = vmul.f32 %v2804_v9, %v2517_v32  ;;  %v5240_v53 = vpop.f32.mrb[156].mxu0  ;;  %v2294_v62 = vpop.f32.mrb[56].mxu1 }
 0x340   :  { %v2623_v30 = vmul.f32 %v2518_v51, %v2518_v51  ;;  %v3028_v57 = vmul.f32 %v2809_v60, %v2518_v51  ;;  %v2295_v20 = vadd.f32 %v2294_v62, %v2062_v56  ;;  %v2143_v19 = vpop.f32.mrb[157].mxu0  ;;  %v2296_v22 = vpop.f32.mrb[57].mxu1 }
 0x341   :  { %v2671_v59 = vadd.f32 %v2670_v2, %v2622_v11  ;;  %v3076_v1 = vadd.f32 %v3075_v25, %v3027_v4  ;;  %v2567_v35 = vadd.f32 %v2566_v12, %v2518_v51  ;;  %v5244_v21 = vpop.f32.mrb[158].mxu0  ;;  %v2297_v31 = vpop.f32.mrb[58].mxu1  ;;  %v2070_v2 = vadd.f32 %v5141_v55, %v5007_v5 }
 0x342   :  { %v2469_v28 = vmul.f32 0.02, %v2295_v20  ;;  %v2298_v34 = vadd.f32 %v2297_v31, %v2065_v42  ;;  %v2299_v49 = vpop.f32.mrb[59].mxu1  ;;  %v2146_v54 = vpop.f32.mrb[159].mxu0  ;;  %v2073_v25 = vadd.f32 %v5148_v14, %v5013_v7  ;;  %v2078_v7 = vadd.f32 %v5158_v23, %v5018_v48 }
 0x343   :  { %v2672_v52 = vadd.f32 %v2671_v59, %v2623_v30  ;;  %v3077_v61 = vadd.f32 %v3076_v1, %v3028_v57  ;;  %v2819_v60 = vpop.permute.xlu0 %2818  ;;  %v2824_v55 = vpop.permute.xlu1 %2823  ;;  %v2081_v54 = vadd.f32 %v5165_v38, %v5021_v18  ;;  %v2086_v38 = vadd.f32 %v5175_v29, %v5023_v3 }
 0x344   :  { %v2519_v10 = vmax.f32 %v2295_v20, %v2469_v28  ;;  %v2470_v43 = vmul.f32 0.02, %v2298_v34 }
 0x346   :  { %v2568_v40 = vadd.f32 %v2567_v35, %v2519_v10  ;;  %v2624_v17 = vmul.f32 %v2519_v10, %v2519_v10  ;;  %v3029_v13 = vmul.f32 %v2814_v26, %v2519_v10  ;;  %v2520_v32 = vmax.f32 %v2298_v34, %v2470_v43 }
 0x347   :  { %v2302_v9 = vpop.f32.mrb[60].mxu1  ;;  %v2829_v35 = vpop.permute.xlu0 %2828 }
 0x348   :  { %v2673_v56 = vadd.f32 %v2672_v52, %v2624_v17  ;;  %v3078_v51 = vadd.f32 %v3077_v61, %v3029_v13  ;;  %v2569_v12 = vadd.f32 %v2568_v40, %v2520_v32  ;;  %v2625_v11 = vmul.f32 %v2520_v32, %v2520_v32  ;;  %v2304_v4 = vpop.f32.mrb[61].mxu1 }
 0x349   :  { %v3030_v62 = vmul.f32 %v2819_v60, %v2520_v32  ;;  %v2303_v42 = vadd.f32 %v2302_v9, %v2070_v2  ;;  %v2305_v30 = vpop.f32.mrb[62].mxu1  ;;  %v2089_v4 = vadd.f32 %v5180_v45, %v5031_v50  ;;  %v2094_v50 = vadd.f32 %v5186_v36, %v5034_v33 }
 0x34a   :  { %v2674_v57 = vadd.f32 %v2673_v56, %v2625_v11  ;;  %v2306_v20 = vadd.f32 %v2305_v30, %v2073_v25  ;;  %v2307_v19 = vpop.f32.mrb[63].mxu1  ;;  %v2834_v56 = vpop.permute.xlu1 %2833 }
 0x34b   :  { %v3079_v22 = vadd.f32 %v3078_v51, %v3030_v62  ;;  %v2471_v59 = vmul.f32 0.02, %v2303_v42 }
 0x34c   :  { %v2472_v1 = vmul.f32 0.02, %v2306_v20 }
 0x34d   :  { %v2521_v5 = vmax.f32 %v2303_v42, %v2471_v59  ;;  %v2839_v42 = vpop.permute.xlu0 %2838 }
 0x34e   :  { %v2522_v14 = vmax.f32 %v2306_v20, %v2472_v1  ;;  %v2844_v29 = vpop.permute.xlu1 %2843 }
 0x34f   :  { %v2570_v31 = vadd.f32 %v2569_v12, %v2521_v5  ;;  %v2626_v28 = vmul.f32 %v2521_v5, %v2521_v5  ;;  %v3031_v34 = vmul.f32 %v2824_v55, %v2521_v5  ;;  %v2310_v49 = vpop.f32.mrb[64].mxu1 }
 0x350   :  { %v2627_v52 = vmul.f32 %v2522_v14, %v2522_v14  ;;  %v3032_v61 = vmul.f32 %v2829_v35, %v2522_v14  ;;  %v2311_v10 = vadd.f32 %v2310_v49, %v2078_v7  ;;  %v2312_v43 = vpop.f32.mrb[65].mxu1 }
 0x351   :  { %v2675_v26 = vadd.f32 %v2674_v57, %v2626_v28  ;;  %v3080_v40 = vadd.f32 %v3079_v22, %v3031_v34  ;;  %v2571_v17 = vadd.f32 %v2570_v31, %v2522_v14  ;;  %v2313_v13 = vpop.f32.mrb[66].mxu1  ;;  %v2849_v34 = vpop.permute.xlu0 %2848 }
 0x352   :  { %v2473_v32 = vmul.f32 0.02, %v2311_v10  ;;  %v2314_v2 = vadd.f32 %v2313_v13, %v2081_v54  ;;  %v2315_v48 = vpop.f32.mrb[67].mxu1 }
 0x353   :  { %v2676_v23 = vadd.f32 %v2675_v26, %v2627_v52  ;;  %v3081_v25 = vadd.f32 %v3080_v40, %v3032_v61 }
 0x354   :  { %v2523_v9 = vmax.f32 %v2311_v10, %v2473_v32  ;;  %v2474_v60 = vmul.f32 0.02, %v2314_v2  ;;  %v2097_v10 = vadd.f32 %v5190_v46, %v5042_v47  ;;  %v2102_v46 = vadd.f32 %v5196_v58, %v5044_v44 }
 0x356   :  { %v2572_v51 = vadd.f32 %v2571_v17, %v2523_v9  ;;  %v2628_v12 = vmul.f32 %v2523_v9, %v2523_v9  ;;  %v3033_v11 = vmul.f32 %v2834_v56, %v2523_v9  ;;  %v2524_v18 = vmax.f32 %v2314_v2, %v2474_v60 }
 0x357   :  { %v2318_v62 = vpop.f32.mrb[68].mxu1 }
 0x358   :  { %v2677_v30 = vadd.f32 %v2676_v23, %v2628_v12  ;;  %v3082_v57 = vadd.f32 %v3081_v25, %v3033_v11  ;;  %v2573_v20 = vadd.f32 %v2572_v51, %v2524_v18  ;;  %v2629_v19 = vmul.f32 %v2524_v18, %v2524_v18  ;;  %v2320_v22 = vpop.f32.mrb[69].mxu1  ;;  %v2854_v51 = vpop.permute.xlu1 %2853 }
 0x359   :  { %v3034_v59 = vmul.f32 %v2839_v42, %v2524_v18  ;;  %v2319_v1 = vadd.f32 %v2318_v62, %v2086_v38  ;;  %v2321_v5 = vpop.f32.mrb[70].mxu1  ;;  %v2105_v38 = vadd.f32 %v5200_v24, %v5050_v37  ;;  %v2859_v62 = vpop.permute.xlu0 %2858  ;;  %v2110_v37 = vadd.f32 %v5208_v63, %v5055_v15 }
 0x35a   :  { %v2678_v55 = vadd.f32 %v2677_v30, %v2629_v19  ;;  %v2322_v7 = vadd.f32 %v2321_v5, %v2089_v4  ;;  %v2323_v14 = vpop.f32.mrb[71].mxu1 }
 0x35b   :  { %v3083_v35 = vadd.f32 %v3082_v57, %v3034_v59  ;;  %v2475_v31 = vmul.f32 0.02, %v2319_v1 }
 0x35c   :  { %v2476_v28 = vmul.f32 0.02, %v2322_v7  ;;  %v2864_v58 = vpop.permute.xlu1 %2863 }
 0x35d   :  { %v2525_v3 = vmax.f32 %v2319_v1, %v2475_v31 }
 0x35e   :  { %v2526_v45 = vmax.f32 %v2322_v7, %v2476_v28  ;;  %v2869_v28 = vpop.permute.xlu0 %2868 }
 0x35f   :  { %v2574_v49 = vadd.f32 %v2573_v20, %v2525_v3  ;;  %v2630_v54 = vmul.f32 %v2525_v3, %v2525_v3  ;;  %v3035_v52 = vmul.f32 %v2844_v29, %v2525_v3  ;;  %v2326_v61 = vpop.f32.mrb[72].mxu1 }
 0x360   :  { %v2631_v43 = vmul.f32 %v2526_v45, %v2526_v45  ;;  %v3036_v26 = vmul.f32 %v2849_v34, %v2526_v45  ;;  %v2327_v40 = vadd.f32 %v2326_v61, %v2094_v50  ;;  %v2328_v17 = vpop.f32.mrb[73].mxu1  ;;  %v2113_v34 = vadd.f32 %v5212_v0, %v5058_v6  ;;  %v5372_v0 = vld [vmem:[#allocation9_spill] sm:$0xff] }
 0x361   :  { %v2679_v13 = vadd.f32 %v2678_v55, %v2630_v54  ;;  %v3084_v32 = vadd.f32 %v3083_v35, %v3035_v52  ;;  %v2575_v2 = vadd.f32 %v2574_v49, %v2526_v45  ;;  %v2329_v48 = vpop.f32.mrb[74].mxu1 }
 0x362   :  { %v2477_v23 = vmul.f32 0.02, %v2327_v40  ;;  %v2330_v25 = vadd.f32 %v2329_v48, %v2097_v10  ;;  %v2331_v33 = vpop.f32.mrb[75].mxu1 }
 0x363   :  { %v2680_v36 = vadd.f32 %v2679_v13, %v2631_v43  ;;  %v3085_v9 = vadd.f32 %v3084_v32, %v3036_v26 }
 0x364   :  { %v2527_v60 = vmax.f32 %v2327_v40, %v2477_v23  ;;  %v2478_v56 = vmul.f32 0.02, %v2330_v25  ;;  %v2874_v23 = vpop.permute.xlu1 %2873 }
 0x366   :  { %v2576_v12 = vadd.f32 %v2575_v2, %v2527_v60  ;;  %v2632_v11 = vmul.f32 %v2527_v60, %v2527_v60  ;;  %v3037_v18 = vmul.f32 %v2854_v51, %v2527_v60  ;;  %v2528_v47 = vmax.f32 %v2330_v25, %v2478_v56  ;;  %v5373_v60 = vld [vmem:[#allocation7_spill] sm:$0xff] }
 0x367   :  { %v2334_v4 = vpop.f32.mrb[76].mxu1  ;;  %v2121_v56 = vadd.f32 %v5220_v27, %v5373_v60  ;;  %v5375_v27 = vld [vmem:[#allocation8_spill] sm:$0xff] }
 0x368   :  { %v2681_v42 = vadd.f32 %v2680_v36, %v2632_v11  ;;  %v3086_v30 = vadd.f32 %v3085_v9, %v3037_v18  ;;  %v2577_v57 = vadd.f32 %v2576_v12, %v2528_v47  ;;  %v2633_v20 = vmul.f32 %v2528_v47, %v2528_v47  ;;  %v2336_v19 = vpop.f32.mrb[77].mxu1  ;;  %v2879_v12 = vpop.permute.xlu0 %2878 }
 0x369   :  { %v3038_v22 = vmul.f32 %v2859_v62, %v2528_v47  ;;  %v2335_v59 = vadd.f32 %v2334_v4, %v2102_v46  ;;  %v2337_v1 = vpop.f32.mrb[78].mxu1  ;;  %v2118_v9 = vadd.f32 %v5372_v0, %v5062_v39 }
 0x36a   :  { %v2682_v5 = vadd.f32 %v2681_v42, %v2633_v20  ;;  %v2338_v55 = vadd.f32 %v2337_v1, %v2105_v38  ;;  %v2339_v7 = vpop.f32.mrb[79].mxu1  ;;  %v2884_v1 = vpop.permute.xlu1 %2883 }
 0x36b   :  { %v3087_v14 = vadd.f32 %v3086_v30, %v3038_v22  ;;  %v2479_v35 = vmul.f32 0.02, %v2335_v59 }
 0x36c   :  { %v2480_v31 = vmul.f32 0.02, %v2338_v55 }
 0x36d   :  { %v2529_v44 = vmax.f32 %v2335_v59, %v2479_v35 }
 0x36e   :  { %v2530_v24 = vmax.f32 %v2338_v55, %v2480_v31 }
 0x36f   :  { %v2578_v3 = vadd.f32 %v2577_v57, %v2529_v44  ;;  %v2634_v29 = vmul.f32 %v2529_v44, %v2529_v44  ;;  %v3039_v50 = vmul.f32 %v2864_v58, %v2529_v44  ;;  %v2342_v45 = vpop.f32.mrb[80].mxu1 }
 0x370   :  { %v2635_v49 = vmul.f32 %v2530_v24, %v2530_v24  ;;  %v3040_v54 = vmul.f32 %v2869_v28, %v2530_v24  ;;  %v2343_v52 = vadd.f32 %v2342_v45, %v2110_v37  ;;  %v2344_v61 = vpop.f32.mrb[81].mxu1  ;;  %v5376_v37 = vld [vmem:[#allocation13_spill] sm:$0xff] }
 0x371   :  { %v2683_v10 = vadd.f32 %v2682_v5, %v2634_v29  ;;  %v3088_v43 = vadd.f32 %v3087_v14, %v3039_v50  ;;  %v2579_v26 = vadd.f32 %v2578_v3, %v2530_v24  ;;  %v2345_v40 = vpop.f32.mrb[82].mxu1  ;;  %v5374_v5 = vld [vmem:[#allocation12_spill] sm:$0xff]  ;;  %v2889_v14 = vpop.permute.xlu0 %2888  ;;  %v2129_v24 = vadd.f32 %v5228_v8, %v5376_v37 }
 0x372   :  { %v2481_v17 = vmul.f32 0.02, %v2343_v52  ;;  %v2346_v13 = vadd.f32 %v2345_v40, %v2113_v34  ;;  %v2347_v15 = vpop.f32.mrb[83].mxu1  ;;  %v2126_v55 = vadd.f32 %v5375_v27, %v5374_v5 }
 0x373   :  { %v2684_v63 = vadd.f32 %v2683_v10, %v2635_v49  ;;  %v3089_v32 = vadd.f32 %v3088_v43, %v3040_v54 }
 0x374   :  { %v2531_v2 = vmax.f32 %v2343_v52, %v2481_v17  ;;  %v2482_v48 = vmul.f32 0.02, %v2346_v13 }
 0x376   :  { %v2580_v25 = vadd.f32 %v2579_v26, %v2531_v2  ;;  %v2636_v33 = vmul.f32 %v2531_v2, %v2531_v2  ;;  %v3041_v36 = vmul.f32 %v2874_v23, %v2531_v2  ;;  %v2532_v6 = vmax.f32 %v2346_v13, %v2482_v48  ;;  %v2894_v13 = vpop.permute.xlu1 %2893  ;;  %v5377_v2 = vld [vmem:[#allocation14_spill] sm:$0xff]  ;;  %v5378_v23 = vld [vmem:[#allocation15_spill] sm:$0xff] }
 0x377   :  { %v2350_v51 = vpop.f32.mrb[84].mxu1  ;;  %v2134_v48 = vadd.f32 %v5234_v16, %v5377_v2  ;;  %v5382_v2 = vld [vmem:[#allocation19_spill] sm:$0xff] }
 0x378   :  { %v2685_v11 = vadd.f32 %v2684_v63, %v2636_v33  ;;  %v3090_v18 = vadd.f32 %v3089_v32, %v3041_v36  ;;  %v2581_v47 = vadd.f32 %v2580_v25, %v2532_v6  ;;  %v2637_v46 = vmul.f32 %v2532_v6, %v2532_v6  ;;  %v2352_v38 = vpop.f32.mrb[85].mxu1  ;;  %v2899_v36 = vpop.permute.xlu0 %2898 }
 0x379   :  { %v3042_v4 = vmul.f32 %v2879_v12, %v2532_v6  ;;  %v2351_v62 = vadd.f32 %v2350_v51, %v2118_v9  ;;  %v2353_v42 = vpop.f32.mrb[86].mxu1  ;;  %v2137_v25 = vadd.f32 %v5236_v41, %v5378_v23 }
 0x37a   :  { %v2686_v30 = vadd.f32 %v2685_v11, %v2637_v46  ;;  %v2354_v57 = vadd.f32 %v2353_v42, %v2121_v56  ;;  %v2355_v20 = vpop.f32.mrb[87].mxu1  ;;  %v2904_v42 = vpop.permute.xlu1 %2903 }
 0x37b   :  { %v3091_v19 = vadd.f32 %v3090_v18, %v3042_v4  ;;  %v2483_v22 = vmul.f32 0.02, %v2351_v62 }
 0x37c   :  { %v2484_v59 = vmul.f32 0.02, %v2354_v57  ;;  %v2909_v20 = vpop.permute.xlu0 %2908 }
 0x37d   :  { %v2533_v39 = vmax.f32 %v2351_v62, %v2483_v22 }
 0x37e   :  { %v2534_v7 = vmax.f32 %v2354_v57, %v2484_v59 }
 0x37f   :  { %v2582_v35 = vadd.f32 %v2581_v47, %v2533_v39  ;;  %v2638_v31 = vmul.f32 %v2533_v39, %v2533_v39  ;;  %v3043_v44 = vmul.f32 %v2884_v1, %v2533_v39  ;;  %v2358_v58 = vpop.f32.mrb[88].mxu1  ;;  %v5380_v1 = vld [vmem:[#allocation17_spill] sm:$0xff] }
 0x380   :  { %v2639_v28 = vmul.f32 %v2534_v7, %v2534_v7  ;;  %v3044_v3 = vmul.f32 %v2889_v14, %v2534_v7  ;;  %v2359_v29 = vadd.f32 %v2358_v58, %v2126_v55  ;;  %v2360_v50 = vpop.f32.mrb[89].mxu1  ;;  %v2145_v5 = vadd.f32 %v5244_v21, %v5380_v1 }
 0x381   :  { %v2687_v45 = vadd.f32 %v2686_v30, %v2638_v31  ;;  %v3092_v34 = vadd.f32 %v3091_v19, %v3043_v44  ;;  %v2583_v49 = vadd.f32 %v2582_v35, %v2534_v7  ;;  %v2361_v54 = vpop.f32.mrb[90].mxu1  ;;  %v5379_v30 = vld [vmem:[#allocation16_spill] sm:$0xff] }
 0x382   :  { %v2485_v52 = vmul.f32 0.02, %v2359_v29  ;;  %v2362_v61 = vadd.f32 %v2361_v54, %v2129_v24  ;;  %v2363_v10 = vpop.f32.mrb[91].mxu1  ;;  %v2142_v41 = vadd.f32 %v5240_v53, %v5379_v30 }
 0x383   :  { %v2688_v43 = vadd.f32 %v2687_v45, %v2639_v28  ;;  %v3093_v26 = vadd.f32 %v3092_v34, %v3044_v3  ;;  %v2914_v45 = vpop.permute.xlu1 %2913 }
 0x384   :  { %v2535_v40 = vmax.f32 %v2359_v29, %v2485_v52  ;;  %v2486_v17 = vmul.f32 0.02, %v2362_v61 }
 0x386   :  { %v2584_v15 = vadd.f32 %v2583_v49, %v2535_v40  ;;  %v2640_v63 = vmul.f32 %v2535_v40, %v2535_v40  ;;  %v3045_v32 = vmul.f32 %v2894_v13, %v2535_v40  ;;  %v2536_v8 = vmax.f32 %v2362_v61, %v2486_v17  ;;  %v2919_v61 = vpop.permute.xlu0 %2918 }
 0x387   :  { %v2366_v33 = vpop.f32.mrb[92].mxu1 }
 0x388   :  { %v2689_v6 = vadd.f32 %v2688_v43, %v2640_v63  ;;  %v3094_v0 = vadd.f32 %v3093_v26, %v3045_v32  ;;  %v2585_v9 = vadd.f32 %v2584_v15, %v2536_v8  ;;  %v2641_v60 = vmul.f32 %v2536_v8, %v2536_v8  ;;  %v2368_v56 = vpop.f32.mrb[93].mxu1  ;;  %v5381_v15 = vld [vmem:[#allocation18_spill] sm:$0xff] }
 0x389   :  { %v3046_v51 = vmul.f32 %v2899_v36, %v2536_v8  ;;  %v2367_v12 = vadd.f32 %v2366_v33, %v2134_v48  ;;  %v2369_v11 = vpop.f32.mrb[94].mxu1 }
 0x38a   :  { %v2690_v18 = vadd.f32 %v2689_v6, %v2641_v60  ;;  %v2370_v47 = vadd.f32 %v2369_v11, %v2137_v25  ;;  %v2371_v46 = vpop.f32.mrb[95].mxu1  ;;  %v2929_v60 = vpop.permute.xlu0 %2928 }
 0x38b   :  { %v3095_v38 = vadd.f32 %v3094_v0, %v3046_v51  ;;  %v2487_v4 = vmul.f32 0.02, %v2367_v12  ;;  %v2924_v0 = vpop.permute.xlu1 %2923  ;;  %v5383_v46 = vld [vmem:[#allocation20_spill] sm:$0xff] }
 0x38c   :  { %v2488_v62 = vmul.f32 0.02, %v2370_v47 }
 0x38d   :  { %v2537_v16 = vmax.f32 %v2367_v12, %v2487_v4 }
 0x38e   :  { %v2538_v57 = vmax.f32 %v2370_v47, %v2488_v62 }
 0x38f   :  { %v2586_v19 = vadd.f32 %v2585_v9, %v2537_v16  ;;  %v2642_v22 = vmul.f32 %v2537_v16, %v2537_v16  ;;  %v3047_v59 = vmul.f32 %v2904_v42, %v2537_v16  ;;  %v2374_v39 = vpop.f32.mrb[96].mxu1 }
 0x390   :  { %v2643_v27 = vmul.f32 %v2538_v57, %v2538_v57  ;;  %v3048_v55 = vmul.f32 %v2909_v20, %v2538_v57  ;;  %v2375_v7 = vadd.f32 %v2374_v39, %v2142_v41  ;;  %v2376_v14 = vpop.f32.mrb[97].mxu1 }
 0x391   :  { %v2691_v35 = vadd.f32 %v2690_v18, %v2642_v22  ;;  %v3096_v31 = vadd.f32 %v3095_v38, %v3047_v59  ;;  %v2587_v44 = vadd.f32 %v2586_v19, %v2538_v57  ;;  %v2377_v58 = vpop.f32.mrb[98].mxu1  ;;  %v5384_v57 = vld [vmem:[#allocation21_spill] sm:$0xff] }
 0x392   :  { %v2489_v37 = vmul.f32 0.02, %v2375_v7  ;;  %v2378_v24 = vadd.f32 %v2377_v58, %v2145_v5  ;;  %v2379_v53 = vpop.f32.mrb[99].mxu1  ;;  %v2934_v5 = vpop.permute.xlu1 %2933 }
 0x393   :  { %v2692_v28 = vadd.f32 %v2691_v35, %v2643_v27  ;;  %v3097_v3 = vadd.f32 %v3096_v31, %v3048_v55  ;;  %v2939_v31 = vpop.permute.xlu0 %2938 }
 0x394   :  { %v2539_v29 = vmax.f32 %v2375_v7, %v2489_v37  ;;  %v2490_v50 = vmul.f32 0.02, %v2378_v24 }
 0x396   :  { %v2588_v34 = vadd.f32 %v2587_v44, %v2539_v29  ;;  %v2644_v49 = vmul.f32 %v2539_v29, %v2539_v29  ;;  %v3049_v54 = vmul.f32 %v2914_v45, %v2539_v29  ;;  %v2540_v21 = vmax.f32 %v2378_v24, %v2490_v50 }
 0x397   :  { %v2382_v52 = vpop.f32.mrb[0].mxu1 }
 0x398   :  { %v2693_v10 = vadd.f32 %v2692_v28, %v2644_v49  ;;  %v3098_v43 = vadd.f32 %v3097_v3, %v3049_v54  ;;  %v2589_v26 = vadd.f32 %v2588_v34, %v2540_v21  ;;  %v2645_v40 = vmul.f32 %v2540_v21, %v2540_v21  ;;  %v2384_v17 = vpop.f32.mrb[1].mxu1  ;;  %v5385_v3 = vld [vmem:[#allocation22_spill] sm:$0xff]  ;;  %v5386_v34 = vld [vmem:[#allocation23_spill] sm:$0xff] }
 0x399   :  { %v3050_v13 = vmul.f32 %v2919_v61, %v2540_v21  ;;  %v3578_v63 = vadd.f32 %v2382_v52, %v5381_v15  ;;  %v2385_v32 = vpop.f32.mrb[2].mxu1  ;;  %v2944_v21 = vpop.permute.xlu1 %2943 }
 0x39a   :  { %v2694_v8 = vadd.f32 %v2693_v10, %v2645_v40  ;;  %v3579_v48 = vadd.f32 %v2385_v32, %v5382_v2  ;;  %v2387_v23 = vpop.f32.mrb[3].mxu1  ;;  %v2949_v40 = vpop.permute.xlu0 %2948  ;;  %v5387_v2 = vld [vmem:[#allocation24_spill] sm:$0xff] }
 0x39b   :  { %v3099_v25 = vadd.f32 %v3098_v43, %v3050_v13  ;;  %v2491_v33 = vmul.f32 0.02, %v3578_v63 }
 0x39c   :  { %v2492_v36 = vmul.f32 0.02, %v3579_v48 }
 0x39d   :  { %v2541_v6 = vmax.f32 %v3578_v63, %v2491_v33 }
 0x39e   :  { %v2542_v9 = vmax.f32 %v3579_v48, %v2492_v36 }
 0x39f   :  { %v2590_v56 = vadd.f32 %v2589_v26, %v2541_v6  ;;  %v2646_v51 = vmul.f32 %v2541_v6, %v2541_v6  ;;  %v3051_v12 = vmul.f32 %v2924_v0, %v2541_v6  ;;  %v2390_v11 = vpop.f32.mrb[4].mxu1 }
 0x3a0   :  { %v2647_v18 = vmul.f32 %v2542_v9, %v2542_v9  ;;  %v3052_v47 = vmul.f32 %v2929_v60, %v2542_v9  ;;  %v3580_v38 = vadd.f32 %v2390_v11, %v5383_v46  ;;  %v2392_v4 = vpop.f32.mrb[5].mxu1  ;;  %v5388_v60 = vld [vmem:[#allocation25_spill] sm:$0xff] }
 0x3a1   :  { %v2695_v62 = vadd.f32 %v2694_v8, %v2646_v51  ;;  %v3100_v16 = vadd.f32 %v3099_v25, %v3051_v12  ;;  %v2591_v42 = vadd.f32 %v2590_v56, %v2542_v9  ;;  %v2393_v30 = vpop.f32.mrb[6].mxu1  ;;  %v2954_v25 = vpop.permute.xlu1 %2953 }
 0x3a2   :  { %v2493_v41 = vmul.f32 0.02, %v3580_v38  ;;  %v3581_v20 = vadd.f32 %v2393_v30, %v5384_v57  ;;  %v2395_v19 = vpop.f32.mrb[7].mxu1  ;;  %v2959_v30 = vpop.permute.xlu0 %2958 }
 0x3a3   :  { %v2696_v22 = vadd.f32 %v2695_v62, %v2647_v18  ;;  %v3101_v59 = vadd.f32 %v3100_v16, %v3052_v47 }
 0x3a4   :  { %v2543_v39 = vmax.f32 %v3580_v38, %v2493_v41  ;;  %v2494_v1 = vmul.f32 0.02, %v3581_v20 }
 0x3a5   :  { %v2964_v16 = vpop.permute.xlu1 %2963 }
 0x3a6   :  { %v2592_v27 = vadd.f32 %v2591_v42, %v2543_v39  ;;  %v2648_v55 = vmul.f32 %v2543_v39, %v2543_v39  ;;  %v3053_v7 = vmul.f32 %v2934_v5, %v2543_v39  ;;  %v2544_v14 = vmax.f32 %v3581_v20, %v2494_v1  ;;  %v5389_v39 = vld [vmem:[#allocation26_spill] sm:$0xff] }
 0x3a7   :  { %v2398_v35 = vpop.f32.mrb[8].mxu1 }
 0x3a8   :  { %v2697_v44 = vadd.f32 %v2696_v22, %v2648_v55  ;;  %v3102_v58 = vadd.f32 %v3101_v59, %v3053_v7  ;;  %v2593_v37 = vadd.f32 %v2592_v27, %v2544_v14  ;;  %v2649_v24 = vmul.f32 %v2544_v14, %v2544_v14  ;;  %v2400_v53 = vpop.f32.mrb[9].mxu1  ;;  %v5390_v55 = vld [vmem:[#allocation27_spill] sm:$0xff] }
 0x3a9   :  { %v3054_v28 = vmul.f32 %v2939_v31, %v2544_v14  ;;  %v3582_v29 = vadd.f32 %v2398_v35, %v5385_v3  ;;  %v2401_v50 = vpop.f32.mrb[10].mxu1  ;;  %v5296_v53 = vpop.permute.xlu0 %1441 }
 0x3aa   :  { %v2698_v45 = vadd.f32 %v2697_v44, %v2649_v24  ;;  %v3583_v49 = vadd.f32 %v2401_v50, %v5386_v34  ;;  %v2403_v54 = vpop.f32.mrb[11].mxu1 }
 0x3ab   :  { %v3103_v52 = vadd.f32 %v3102_v58, %v3054_v28  ;;  %v2495_v61 = vmul.f32 0.02, %v3582_v29 }
 0x3ac   :  { %v2496_v10 = vmul.f32 0.02, %v3583_v49 }
 0x3ad   :  { %v2545_v43 = vmax.f32 %v3582_v29, %v2495_v61 }
 0x3ae   :  { %v2546_v26 = vmax.f32 %v3583_v49, %v2496_v10  ;;  %v5391_v49 = vld [vmem:[#allocation28_spill] sm:$0xff] }
 0x3af   :  { %v2594_v17 = vadd.f32 %v2593_v37, %v2545_v43  ;;  %v2650_v13 = vmul.f32 %v2545_v43, %v2545_v43  ;;  %v3055_v15 = vmul.f32 %v2944_v21, %v2545_v43  ;;  %v2406_v63 = vpop.f32.mrb[12].mxu1  ;;  %v2969_v37 = vpop.permute.xlu1 %2968 }
 0x3b0   :  { %v2651_v32 = vmul.f32 %v2546_v26, %v2546_v26  ;;  %v3056_v8 = vmul.f32 %v2949_v40, %v2546_v26  ;;  %v3584_v48 = vadd.f32 %v2406_v63, %v5387_v2  ;;  %v2408_v23 = vpop.f32.mrb[13].mxu1  ;;  %v5392_v40 = vld [vmem:[#allocation29_spill] sm:$0xff]  ;;  %v2974_v2 = vpop.permute.xlu0 %2973 }
 0x3b1   :  { %v2699_v33 = vadd.f32 %v2698_v45, %v2650_v13  ;;  %v3104_v36 = vadd.f32 %v3103_v52, %v3055_v15  ;;  %v2595_v6 = vadd.f32 %v2594_v17, %v2546_v26  ;;  %v2409_v0 = vpop.f32.mrb[14].mxu1 }
 0x3b2   :  { %v2497_v9 = vmul.f32 0.02, %v3584_v48  ;;  %v3585_v56 = vadd.f32 %v2409_v0, %v5388_v60  ;;  %v2411_v51 = vpop.f32.mrb[15].mxu1 }
 0x3b3   :  { %v2700_v12 = vadd.f32 %v2699_v33, %v2651_v32  ;;  %v3105_v11 = vadd.f32 %v3104_v36, %v3056_v8 }
 0x3b4   :  { %v2547_v18 = vmax.f32 %v3584_v48, %v2497_v9  ;;  %v2498_v47 = vmul.f32 0.02, %v3585_v56 }
 0x3b6   :  { %v2596_v46 = vadd.f32 %v2595_v6, %v2547_v18  ;;  %v2652_v38 = vmul.f32 %v2547_v18, %v2547_v18  ;;  %v3057_v4 = vmul.f32 %v2954_v25, %v2547_v18  ;;  %v2548_v62 = vmax.f32 %v3585_v56, %v2498_v47  ;;  %v2979_v6 = vpop.permute.xlu1 %2978 }
 0x3b7   :  { %v2414_v42 = vpop.f32.mrb[16].mxu1 }
 0x3b8   :  { %v2701_v41 = vadd.f32 %v2700_v12, %v2652_v38  ;;  %v3106_v57 = vadd.f32 %v3105_v11, %v3057_v4  ;;  %v2597_v20 = vadd.f32 %v2596_v46, %v2548_v62  ;;  %v2653_v19 = vmul.f32 %v2548_v62, %v2548_v62  ;;  %v2416_v22 = vpop.f32.mrb[17].mxu1  ;;  %v5393_v11 = vld [vmem:[#allocation30_spill] sm:$0xff]  ;;  %v5394_v38 = vld [vmem:[#allocation31_spill] sm:$0xff] }
 0x3b9   :  { %v3058_v59 = vmul.f32 %v2959_v30, %v2548_v62  ;;  %v3586_v1 = vadd.f32 %v2414_v42, %v5389_v39  ;;  %v2417_v5 = vpop.f32.mrb[18].mxu1 }
 0x3ba   :  { %v2702_v27 = vadd.f32 %v2701_v41, %v2653_v19  ;;  %v3587_v7 = vadd.f32 %v2417_v5, %v5390_v55  ;;  %v2419_v14 = vpop.f32.mrb[19].mxu1  ;;  %v2989_v19 = vpop.permute.xlu1 %2988  ;;  %v5395_v55 = vld [vmem:[#allocation32_spill] sm:$0xff] }
 0x3bb   :  { %v3107_v35 = vadd.f32 %v3106_v57, %v3058_v59  ;;  %v2499_v31 = vmul.f32 0.02, %v3586_v1  ;;  %v2984_v57 = vpop.permute.xlu0 %2983 }
 0x3bc   :  { %v2500_v44 = vmul.f32 0.02, %v3587_v7 }
 0x3bd   :  { %v2549_v58 = vmax.f32 %v3586_v1, %v2499_v31 }
 0x3be   :  { %v2550_v24 = vmax.f32 %v3587_v7, %v2500_v44 }
 0x3bf   :  { %v2598_v28 = vadd.f32 %v2597_v20, %v2549_v58  ;;  %v2654_v3 = vmul.f32 %v2549_v58, %v2549_v58  ;;  %v3059_v29 = vmul.f32 %v2964_v16, %v2549_v58  ;;  %v2422_v50 = vpop.f32.mrb[20].mxu1 }
 0x3c0   :  { %v2655_v45 = vmul.f32 %v2550_v24, %v2550_v24  ;;  %v3060_v34 = vmul.f32 %v2969_v37, %v2550_v24  ;;  %v3588_v54 = vadd.f32 %v2422_v50, %v5391_v49  ;;  %v2424_v21 = vpop.f32.mrb[21].mxu1  ;;  %v2994_v49 = vpop.permute.xlu0 %2993 }
 0x3c1   :  { %v2703_v52 = vadd.f32 %v2702_v27, %v2654_v3  ;;  %v3108_v61 = vadd.f32 %v3107_v35, %v3059_v29  ;;  %v2599_v10 = vadd.f32 %v2598_v28, %v2550_v24  ;;  %v2425_v43 = vpop.f32.mrb[22].mxu1  ;;  %v5396_v24 = vld [vmem:[#allocation33_spill] sm:$0xff] }
 0x3c2   :  { %v2501_v26 = vmul.f32 0.02, %v3588_v54  ;;  %v3589_v17 = vadd.f32 %v2425_v43, %v5392_v40  ;;  %v2427_v13 = vpop.f32.mrb[23].mxu1  ;;  %v2999_v43 = vpop.permute.xlu1 %2998 }
 0x3c3   :  { %v2704_v15 = vadd.f32 %v2703_v52, %v2655_v45  ;;  %v3109_v63 = vadd.f32 %v3108_v61, %v3060_v34 }
 0x3c4   :  { %v2551_v32 = vmax.f32 %v3588_v54, %v2501_v26  ;;  %v2502_v8 = vmul.f32 0.02, %v3589_v17 }
 0x3c6   :  { %v2600_v48 = vadd.f32 %v2599_v10, %v2551_v32  ;;  %v2656_v23 = vmul.f32 %v2551_v32, %v2551_v32  ;;  %v3061_v25 = vmul.f32 %v2974_v2, %v2551_v32  ;;  %v2552_v33 = vmax.f32 %v3589_v17, %v2502_v8  ;;  %v5397_v32 = vld [vmem:[#allocation34_spill] sm:$0xff] }
 0x3c7   :  { %v2430_v36 = vpop.f32.mrb[24].mxu1 }
 0x3c8   :  { %v2705_v0 = vadd.f32 %v2704_v15, %v2656_v23  ;;  %v3110_v9 = vadd.f32 %v3109_v63, %v3061_v25  ;;  %v2601_v60 = vadd.f32 %v2600_v48, %v2552_v33  ;;  %v2657_v56 = vmul.f32 %v2552_v33, %v2552_v33  ;;  %v2432_v51 = vpop.f32.mrb[25].mxu1  ;;  %v5398_v23 = vld [vmem:[#allocation35_spill] sm:$0xff] }
 0x3c9   :  { %v3062_v12 = vmul.f32 %v2979_v6, %v2552_v33  ;;  %v3590_v18 = vadd.f32 %v2430_v36, %v5393_v11  ;;  %v2433_v47 = vpop.f32.mrb[26].mxu1  ;;  %v3009_v51 = vpop.permute.xlu1 %3008 }
 0x3ca   :  { %v2706_v46 = vadd.f32 %v2705_v0, %v2657_v56  ;;  %v3591_v4 = vadd.f32 %v2433_v47, %v5394_v38  ;;  %v2435_v62 = vpop.f32.mrb[27].mxu1 }
 0x3cb   :  { %v3111_v16 = vadd.f32 %v3110_v9, %v3062_v12  ;;  %v2503_v42 = vmul.f32 0.02, %v3590_v18 }
 0x3cc   :  { %v2504_v30 = vmul.f32 0.02, %v3591_v4 }
 0x3cd   :  { %v2553_v41 = vmax.f32 %v3590_v18, %v2503_v42 }
 0x3ce   :  { %v2554_v20 = vmax.f32 %v3591_v4, %v2504_v30  ;;  %v5399_v4 = vld [vmem:[#allocation36_spill] sm:$0xff] }
 0x3cf   :  { %v2602_v22 = vadd.f32 %v2601_v60, %v2553_v41  ;;  %v2658_v59 = vmul.f32 %v2553_v41, %v2553_v41  ;;  %v3063_v39 = vmul.f32 %v2984_v57, %v2553_v41  ;;  %v2438_v1 = vpop.f32.mrb[28].mxu1  ;;  %v3004_v60 = vpop.permute.xlu0 %3003 }
 0x3d0   :  { %v2659_v5 = vmul.f32 %v2554_v20, %v2554_v20  ;;  %v3064_v27 = vmul.f32 %v2989_v19, %v2554_v20  ;;  %v3592_v7 = vadd.f32 %v2438_v1, %v5395_v55  ;;  %v2440_v14 = vpop.f32.mrb[29].mxu1 }
 0x3d1   :  { %v2707_v35 = vadd.f32 %v2706_v46, %v2658_v59  ;;  %v3112_v31 = vadd.f32 %v3111_v16, %v3063_v39  ;;  %v2603_v44 = vadd.f32 %v2602_v22, %v2554_v20  ;;  %v2441_v58 = vpop.f32.mrb[30].mxu1 }
 0x3d2   :  { %v2505_v37 = vmul.f32 0.02, %v3592_v7  ;;  %v3593_v28 = vadd.f32 %v2441_v58, %v5396_v24  ;;  %v2443_v3 = vpop.f32.mrb[31].mxu1 }
 0x3d3   :  { %v2708_v29 = vadd.f32 %v2707_v35, %v2659_v5  ;;  %v3113_v50 = vadd.f32 %v3112_v31, %v3064_v27  ;;  %v3014_v27 = vpop.permute.xlu0 %3013  ;;  %v3019_v31 = vpop.permute.xlu1 %3018  ;;  %v3138_v3 = vlaneseq }
 0x3d4   :  { %v2555_v45 = vmax.f32 %v3592_v7, %v2505_v37  ;;  %v2506_v34 = vmul.f32 0.02, %v3593_v28 }
 0x3d6   :  { %v2604_v54 = vadd.f32 %v2603_v44, %v2555_v45  ;;  %v2660_v21 = vmul.f32 %v2555_v45, %v2555_v45  ;;  %v3065_v52 = vmul.f32 %v2994_v49, %v2555_v45  ;;  %v2556_v61 = vmax.f32 %v3593_v28, %v2506_v34 }
 0x3d7   :  { %v2446_v10 = vpop.f32.mrb[32].mxu1 }
 0x3d8   :  { %v2709_v26 = vadd.f32 %v2708_v29, %v2660_v21  ;;  %v3114_v40 = vadd.f32 %v3113_v50, %v3065_v52  ;;  %v2605_v17 = vadd.f32 %v2604_v54, %v2556_v61  ;;  %v2661_v13 = vmul.f32 %v2556_v61, %v2556_v61  ;;  %v2448_v15 = vpop.f32.mrb[33].mxu1 }
 0x3d9   :  { %v3066_v63 = vmul.f32 %v2999_v43, %v2556_v61  ;;  %v3594_v8 = vadd.f32 %v2446_v10, %v5397_v32  ;;  %v2449_v2 = vpop.f32.mrb[34].mxu1  ;;  %v3139_v54 = vshrl.u32 %v3138_v3, 7  ;;  %v3136_v15 = vpop.permute.xlu0 %3135 }
 0x3da   :  { %v2710_v48 = vadd.f32 %v2709_v26, %v2661_v13  ;;  %v3595_v25 = vadd.f32 %v2449_v2, %v5398_v23  ;;  %v2451_v33 = vpop.f32.mrb[35].mxu1 }
 0x3db   :  { %v3115_v36 = vadd.f32 %v3114_v40, %v3066_v63  ;;  %v2507_v6 = vmul.f32 0.02, %v3594_v8  ;;  %v3140_v40 = vsub.s32 0, %v3139_v54 }
 0x3dc   :  { %v2508_v0 = vmul.f32 0.02, %v3595_v25 }
 0x3dd   :  { %v2557_v9 = vmax.f32 %v3594_v8, %v2507_v6 }
 0x3de   :  { %v2558_v56 = vmax.f32 %v3595_v25, %v2508_v0 }
 0x3df   :  { %v2606_v12 = vadd.f32 %v2605_v17, %v2557_v9  ;;  %v2662_v11 = vmul.f32 %v2557_v9, %v2557_v9  ;;  %v3067_v18 = vmul.f32 %v3004_v60, %v2557_v9  ;;  %v2454_v47 = vpop.f32.mrb[36].mxu1 }
 0x3e0   :  { %v2663_v46 = vmul.f32 %v2558_v56, %v2558_v56  ;;  %v3068_v38 = vmul.f32 %v3009_v51, %v2558_v56  ;;  %v3596_v62 = vadd.f32 %v2454_v47, %v5399_v4  ;;  %v2456_v16 = vpop.f32.mrb[37].mxu1  ;;  %v3149_v51 = vpop.permute.xlu1 %3148 }
 0x3e1   :  { %v2711_v42 = vadd.f32 %v2710_v48, %v2662_v11  ;;  %v3116_v30 = vadd.f32 %v3115_v36, %v3067_v18  ;;  %v2607_v41 = vadd.f32 %v2606_v12, %v2558_v56  ;;  %v2457_v57 = vpop.f32.mrb[38].mxu1  ;;  %v3141_v48 = vrot.slane %v3136_v15, %v3140_v40 }
 0x3e2   :  { %v2509_v20 = vmul.f32 0.02, %v3596_v62  ;;  %v3597_v19 = vadd.f32 %v2457_v57, %v5296_v53  ;;  %v2459_v22 = vpop.f32.mrb[39].mxu1  ;;  %v3154_v11 = vrot.slane %v3149_v51, %v3140_v40 }
 0x3e3   :  { %v2712_v59 = vadd.f32 %v2711_v42, %v2663_v46  ;;  %v3117_v39 = vadd.f32 %v3116_v30, %v3068_v38 }
 0x3e4   :  { %v2559_v1 = vmax.f32 %v3596_v62, %v2509_v20  ;;  %v2510_v5 = vmul.f32 0.02, %v3597_v19 }
 0x3e6   :  { %v2608_v55 = vadd.f32 %v2607_v41, %v2559_v1  ;;  %v2664_v7 = vmul.f32 %v2559_v1, %v2559_v1  ;;  %v3069_v14 = vmul.f32 %v3014_v27, %v2559_v1  ;;  %v2560_v35 = vmax.f32 %v3597_v19, %v2510_v5 }
 0x3e8   :  { %v2713_v44 = vadd.f32 %v2712_v59, %v2664_v7  ;;  %v3118_v58 = vadd.f32 %v3117_v39, %v3069_v14  ;;  %v2609_v37 = vadd.f32 %v2608_v55, %v2560_v35  ;;  %v2665_v24 = vmul.f32 %v2560_v35, %v2560_v35 }
 0x3e9   :  { %v3070_v28 = vmul.f32 %v3019_v31, %v2560_v35 }
 0x3ea   :  { %v2610_v29 = vrot.slane %v2609_v37, 4  ;;  %v2714_v50 = vadd.f32 %v2713_v44, %v2665_v24 }
 0x3eb   :  { %v3119_v53 = vadd.f32 %v3118_v58, %v3070_v28 }
 0x3ec   :  { %v2611_v45 = vadd.f32 %v2610_v29, %v2609_v37  ;;  %v2715_v34 = vrot.slane %v2714_v50, 4 }
 0x3ed   :  { %v3120_v49 = vrot.slane %v3119_v53, 4 }
 0x3ee   :  { %v2612_v21 = vrot.slane %v2611_v45, 2  ;;  %v2716_v52 = vadd.f32 %v2715_v34, %v2714_v50 }
 0x3ef   :  { %v3121_v61 = vadd.f32 %v3120_v49, %v3119_v53 }
 0x3f0   :  { %v2613_v10 = vadd.f32 %v2612_v21, %v2611_v45  ;;  %v2717_v43 = vrot.slane %v2716_v52, 2 }
 0x3f1   :  { %v3122_v26 = vrot.slane %v3121_v61, 2 }
 0x3f2   :  { %v2614_v17 = vrot.slane %v2613_v10, 1  ;;  %v2718_v13 = vadd.f32 %v2717_v43, %v2716_v52 }
 0x3f3   :  { %v3123_v63 = vadd.f32 %v3122_v26, %v3121_v61 }
 0x3f4   :  { %v2615_v32 = vadd.f32 %v2614_v17, %v2613_v10  ;;  %v2719_v8 = vrot.slane %v2718_v13, 1 }
 0x3f5   :  { %v3124_v2 = vrot.slane %v3123_v63, 1 }
 0x3f6   :  { %v2720_v23 = vadd.f32 %v2719_v8, %v2718_v13  ;;  %v3126_v25 = vmul.f32 0.0025, %v2615_v32 }
 0x3f7   :  { %v3125_v33 = vadd.f32 %v3124_v2, %v3123_v63 }
 0x3f8   :  { %v3127_v36 = vmul.f32 0.0025, %v2720_v23  ;;  %v3128_v6 = vmul.f32 %v3126_v25, %v3126_v25  ;;  %v3142_v0 = vmul.f32 %v3141_v48, %v3126_v25 }
 0x3fa   :  { %v3129_v9 = vsub.f32 %v3127_v36, %v3128_v6  ;;  %v3143_v60 = vsub.f32 %v3125_v33, %v3142_v0 }
 0x3fc   :  { %v3130_v56 = vadd.f32 1e-05, %v3129_v9 }
 0x3fe   :  { %3819 = vrsqrt.f32 %v3130_v56 }
 0x408   :  { %v3820_v12 = vpop.eup %3819 }
 0x409   :  { %v3144_v18 = vmul.f32 %v3820_v12, %v3143_v60 }
 0x40b   :  { %v3155_v47 = vadd.f32 %v3154_v11, %v3144_v18 }
 0x40d   :  { %v3156_v46 = vsub.f32 0.0, %v3155_v47 }
 0x40f   :  { %v3157_v38 = vmul.f32 1.442695, %v3156_v46 }
 0x411   :  { %3821 = vpow2.f32 %v3157_v38 }
 0x41b   :  { %v3822_v4 = vpop.eup %3821 }
 0x41c   :  { %v3159_v62 = vadd.f32 1.0, %v3822_v4 }
 0x41e   :  { %3823 = vrcp.f32 %v3159_v62 }
 0x428   :  { %v3824_v16 = vpop.eup %3823 }
 0x429   :  { %3161 = vst [vmem:[#allocation4] sm:$0x1] %v3824_v16 }
 0x42a   :  { %3836 = shalt.err (!%p3833_p4)
}
 0x42b   :  { %s3837_s11 = scalar_lea.hbm %s5329_s10, 16 }
 0x42c   :  { %p3838_p5 = scmp.ne.s32.totalorder %s5329_s10, %s3837_s11  ;;  %p3841_p6 = scmp.lt.u32.totalorder %s3837_s11, %s5329_s10 }
 0x42e   :  { %p3843_p7 = pnand %p3841_p6, %p3838_p5 }
 0x430   :  { %3846 = shalt.err (!%p3843_p7)
}
 0x431   :  { %3171 = dma.vmem_to_hbm [thread:$0]  %s3169_s27, 16, %s5329_s10, [#allocation5]  }
 0x432   :  { %3847 = dma.done.wait [#allocation5], 16  }
 0x433   :  { %3848 = vsyncadd [#allocation5], 4294967280 }
 0x434   :  { %3175 = vsyncpa [#allocation5], 1 }

</bundles_post_ra>
